<compile_context>
chip_gen: v7x
topology: tpu7x:2x2x1
jax: 0.10.0
libtpu: 0.0.40
codegen_flags: <defaults>
</compile_context>

<pallas_src>
import functools

import jax
import jax.numpy as jnp
from jax import lax
from jax.experimental import pallas as pl
from jax.experimental.pallas import tpu as pltpu

INPUT_SIZE = 5
HIDDEN_SIZE = 64
NUM_LAYERS = 2
OUTPUT_SIZE = 1


def _gates_to_hc(gates, c_prev):
    """gates: (B, 4H) pre-activation with columns [i, f, o, 2*g]; c_prev: (B, H).

    One full-width sigmoid recovers all four gates (tanh(g) = 2*sigmoid(2g) - 1),
    halving per-step EUP work vs. sigmoid+tanh over the full gate block.
    """
    H = HIDDEN_SIZE
    sig = jax.nn.sigmoid(gates)                 # single (B, 4H) EUP pass
    i = sig[:, 0 * H:1 * H]
    f = sig[:, 1 * H:2 * H]
    o = sig[:, 2 * H:3 * H]
    g = 2.0 * sig[:, 3 * H:4 * H] - 1.0         # == tanh(g_pre)
    c_new = f * c_prev + i * g
    h_new = o * jnp.tanh(c_new)                 # only (B, H) wide
    return h_new, c_new


def lstm_kernel(x_ref,                      # (t_chunk, BB, H) bf16, time-major, feat-padded
                w0_ref, b0_ref,             # (2H, 4H) bf16, (1, 4H) f32   layer 0 stacked
                w1_ref, b1_ref,             # (2H, 4H) bf16, (1, 4H) f32   layer 1 stacked
                fcw_ref, fcb_ref,           # (H, 1) f32, (1, 1) f32
                out_ref,                    # (BB, 1) f32
                h_sc, c_sc,                 # (BB, 2H) f32 packed (layer0 | layer1)
                *, t_chunk, last_valid, unroll):
    H = HIDDEN_SIZE
    chunk = pl.program_id(1)
    n_chunks = pl.num_programs(1)

    @pl.when(chunk == 0)
    def _():
        h_sc[...] = jnp.zeros_like(h_sc)
        c_sc[...] = jnp.zeros_like(c_sc)

    # Masking only exists when T does not divide into full chunks (static).
    has_remainder = (last_valid != t_chunk)
    if has_remainder:
        s_valid = jnp.where(chunk == n_chunks - 1,
                            jnp.int32(last_valid), jnp.int32(t_chunk))
    else:
        s_valid = None

    # Hoist bias loads out of the time loop (JAX does not CSE them per-iter).
    b0 = b0_ref[...]
    b1 = b1_ref[...]

    # Unpack lane-dense state into per-layer loop carries (stay in vregs).
    h_packed = h_sc[...]
    c_packed = c_sc[...]
    h1, h2 = h_packed[:, :H], h_packed[:, H:]
    c1, c2 = c_packed[:, :H], c_packed[:, H:]

    def l0(x_t, h1, c1):
        # fused [x_t | h1] @ [[W_ih0]; 0; [W_hh0]]   K = 2H = 128, bf16 operands
        xh = jnp.concatenate([x_t, h1.astype(jnp.bfloat16)], axis=1)
        g = jnp.dot(xh, w0_ref[...], preferred_element_type=jnp.float32) + b0
        return _gates_to_hc(g, c1)

    def l1(h1, h2, c2):
        # fused [h1 | h2] @ [[W_ih1]; [W_hh1]]       K = 2H = 128, bf16 operands
        hh = jnp.concatenate([h1.astype(jnp.bfloat16),
                              h2.astype(jnp.bfloat16)], axis=1)
        g = jnp.dot(hh, w1_ref[...], preferred_element_type=jnp.float32) + b1
        return _gates_to_hc(g, c2)

    # Prologue: layer 0 of the chunk's first step (every chunk has >= 1 valid step).
    h1, c1 = l0(x_ref[0], h1, c1)

    def step(t, carry):
        h1, c1, h2, c2 = carry
        # layer 1 of step t and layer 0 of step t+1 are data-independent:
        # one layer's MXU pass overlaps the other's EUP/VPU work.
        h2n, c2n = l1(h1, h2, c2)
        h1n, c1n = l0(x_ref[t + 1], h1, c1)
        if has_remainder:
            v1 = t < s_valid
            v0 = (t + 1) < s_valid
            h2n = jnp.where(v1, h2n, h2)
            c2n = jnp.where(v1, c2n, c2)
            h1n = jnp.where(v0, h1n, h1)
            c1n = jnp.where(v0, c1n, c1)
        return h1n, c1n, h2n, c2n

    h1, c1, h2, c2 = lax.fori_loop(0, t_chunk - 1, step, (h1, c1, h2, c2),
                                   unroll=unroll)

    # Epilogue: layer 1 of the chunk's last step.
    h2n, c2n = l1(h1, h2, c2)
    if has_remainder:
        v = (t_chunk - 1) < s_valid
        h2n = jnp.where(v, h2n, h2)
        c2n = jnp.where(v, c2n, c2)
    h2, c2 = h2n, c2n

    # Write packed state back once per chunk (full-vreg, unmasked stores).
    h_sc[...] = jnp.concatenate([h1, h2], axis=1)
    c_sc[...] = jnp.concatenate([c1, c2], axis=1)

    # FC head only on the final time chunk == fc(out[:, -1, :]).
    @pl.when(chunk == n_chunks - 1)
    def _():
        out_ref[...] = (
            jnp.dot(h2, fcw_ref[...], preferred_element_type=jnp.float32)
            + fcb_ref[...]
        )


def _batch_tiling(B):
    """(BB, Bp): tile <= 64 rows (vreg pressure), multiple of 16 (bf16 sublane
    packing), and >= 2 tiles whenever possible so the batch grid axis can be
    sharded across v7x's two TensorCores."""
    if B <= 8:
        return 8, 8
    half = pl.cdiv(B, 2)
    BB = min(64, max(16, pl.cdiv(half, 16) * 16))
    Bp = pl.cdiv(B, BB) * BB
    return BB, Bp


def _time_chunking(T, max_chunk):
    """(t_chunk, n_chunks, last_valid). T is later padded to n_chunks*t_chunk;
    the last chunk only executes `last_valid` real steps (others are masked)."""
    if T <= max_chunk:
        return T, 1, T
    n_chunks = pl.cdiv(T, max_chunk)
    last_valid = T - (n_chunks - 1) * max_chunk
    return max_chunk, n_chunks, last_valid


def anomaly_detection_forward(x, packed_params, *, max_chunk=256):
    """x: (B, T, I) float32.  Returns (B, OUTPUT_SIZE) float32."""
    B, T, I = x.shape
    H = HIDDEN_SIZE
    assert I == INPUT_SIZE and I <= H
    w0, b0, w1, b1, fcw, fcb = packed_params

    BB, Bp = _batch_tiling(B)
    t_chunk, n_chunks, last_valid = _time_chunking(T, max_chunk)
    T_pad = n_chunks * t_chunk

    # Pad batch (sublane tiling), time (chunking; padded steps are masked in
    # the kernel) and features I -> H so the in-kernel [x_t | h1] concat is a
    # clean 64+64 lane concat with K = 2H = 128.
    x = jnp.pad(x, ((0, Bp - B), (0, T_pad - T), (0, H - I)))
    x = x.astype(jnp.bfloat16)                  # halves x DMA / VMEM footprint
    x_tm = jnp.transpose(x, (1, 0, 2))          # (T_pad, Bp, H) time-major

    n_batch = Bp // BB
    trips = t_chunk - 1
    unroll = True if trips <= 8 else 8          # partial unroll for LLO visibility

    kernel = functools.partial(lstm_kernel, t_chunk=t_chunk,
                               last_valid=last_valid, unroll=unroll)

    def full(a):
        return pl.BlockSpec(a.shape, lambda b, c: (0,) * a.ndim)

    out = pl.pallas_call(
        kernel,
        out_shape=jax.ShapeDtypeStruct((Bp, OUTPUT_SIZE), jnp.float32),
        grid_spec=pltpu.PrefetchScalarGridSpec(
            num_scalar_prefetch=0,
            grid=(n_batch, n_chunks),
            in_specs=[
                pl.BlockSpec((t_chunk, BB, H), lambda b, c: (c, b, 0)),  # x chunk
                full(w0), full(b0),
                full(w1), full(b1),
                full(fcw), full(fcb),
            ],
            out_specs=pl.BlockSpec((BB, OUTPUT_SIZE), lambda b, c: (b, 0)),
            scratch_shapes=[
                pltpu.VMEM((BB, 2 * H), jnp.float32),   # packed (h1 | h2)
                pltpu.VMEM((BB, 2 * H), jnp.float32),   # packed (c1 | c2)
            ],
        ),
        compiler_params=pltpu.CompilerParams(
            dimension_semantics=("parallel", "arbitrary")),
    )(x_tm, w0, b0, w1, b1, fcw, fcb)

    return out[:B]


def init_params(key):
    """Raw PyTorch-style LSTM/Linear params, U(-1/sqrt(H), 1/sqrt(H))."""
    H, I = HIDDEN_SIZE, INPUT_SIZE
    bound = 1.0 / jnp.sqrt(jnp.float32(H))
    ks = jax.random.split(key, 10)
    u = lambda k, shape: jax.random.uniform(
        k, shape, jnp.float32, minval=-bound, maxval=bound)
    return (u(ks[0], (4 * H, I)), u(ks[1], (4 * H, H)),       # layer 0 W_ih, W_hh
            u(ks[2], (4 * H,)), u(ks[3], (4 * H,)),           # layer 0 b_ih, b_hh
            u(ks[4], (4 * H, H)), u(ks[5], (4 * H, H)),       # layer 1 W_ih, W_hh
            u(ks[6], (4 * H,)), u(ks[7], (4 * H,)),           # layer 1 b_ih, b_hh
            u(ks[8], (OUTPUT_SIZE, H)), u(ks[9], (OUTPUT_SIZE,)))  # fc


def pack_params(raw):
    """Pack raw params for the kernel: fused [x|h] stacked weights with gate
    column order [i, f, o, 2*g] (single-sigmoid trick), bf16 matmul weights,
    summed f32 biases, feature-padded layer-0 rows."""
    (w_ih0, w_hh0, b_ih0, b_hh0,
     w_ih1, w_hh1, b_ih1, b_hh1, fc_w, fc_b) = raw
    H, I = HIDDEN_SIZE, INPUT_SIZE

    def reorder_cols(wT):
        # wT: (K, 4H), columns in PyTorch gate order [i | f | g | o]
        # -> [i | f | o | 2*g] so sigmoid(2*g_pre) recovers tanh(g_pre).
        i = wT[:, 0:H]
        f = wT[:, H:2 * H]
        g = wT[:, 2 * H:3 * H]
        o = wT[:, 3 * H:4 * H]
        return jnp.concatenate([i, f, o, 2.0 * g], axis=1)

    # layer 0: rows [0:I] = W_ih^T, rows [I:H] = 0 (feature padding of x),
    #          rows [H:2H] = W_hh^T.
    w0 = jnp.zeros((2 * H, 4 * H), jnp.float32)
    w0 = w0.at[:I, :].set(reorder_cols(w_ih0.T))
    w0 = w0.at[H:, :].set(reorder_cols(w_hh0.T))
    b0 = reorder_cols((b_ih0 + b_hh0).reshape(1, 4 * H))

    # layer 1: [W_ih^T ; W_hh^T] -> (2H, 4H).
    w1 = jnp.concatenate([reorder_cols(w_ih1.T), reorder_cols(w_hh1.T)], axis=0)
    b1 = reorder_cols((b_ih1 + b_hh1).reshape(1, 4 * H))

    return (w0.astype(jnp.bfloat16), b0,
            w1.astype(jnp.bfloat16), b1,
            fc_w.T, fc_b.reshape(1, OUTPUT_SIZE))


def reference_forward(x, raw):
    """Pure-JAX f32 reference with exact PyTorch LSTM semantics."""
    (w_ih0, w_hh0, b_ih0, b_hh0,
     w_ih1, w_hh1, b_ih1, b_hh1, fc_w, fc_b) = raw
    B, T, _ = x.shape
    H = HIDDEN_SIZE

    def cell(x_t, h, c, w_ih, w_hh, b_ih, b_hh):
        gates = x_t @ w_ih.T + h @ w_hh.T + b_ih + b_hh
        i = jax.nn.sigmoid(gates[:, 0 * H:1 * H])
        f = jax.nn.sigmoid(gates[:, 1 * H:2 * H])
        g = jnp.tanh(gates[:, 2 * H:3 * H])
        o = jax.nn.sigmoid(gates[:, 3 * H:4 * H])
        c = f * c + i * g
        h = o * jnp.tanh(c)
        return h, c

    h1 = jnp.zeros((B, H), jnp.float32)
    c1 = jnp.zeros((B, H), jnp.float32)
    h2 = jnp.zeros((B, H), jnp.float32)
    c2 = jnp.zeros((B, H), jnp.float32)
    for t in range(T):
        h1, c1 = cell(x[:, t, :], h1, c1, w_ih0, w_hh0, b_ih0, b_hh0)
        h2, c2 = cell(h1, h2, c2, w_ih1, w_hh1, b_ih1, b_hh1)
    return h2 @ fc_w.T + fc_b


if __name__ == "__main__":
    key = jax.random.PRNGKey(0)
    k_x, k_x2, k_p = jax.random.split(key, 3)

    raw = init_params(k_p)
    packed = pack_params(raw)

    # Primary small case (batch=2, seq=8).
    B, T = 2, 8
    x = jax.random.normal(k_x, (B, T, INPUT_SIZE), dtype=jnp.float32)
    out = jax.block_until_ready(anomaly_detection_forward(x, packed))
    ref = reference_forward(x, raw)
    assert out.shape == (B, OUTPUT_SIZE)
    err = float(jnp.max(jnp.abs(out - ref)))
    assert jnp.allclose(out, ref, atol=2e-2, rtol=2e-2), err

    # Exercise multi-chunk recurrence, the remainder-step masking and batch
    # tiling at small shapes (T=11 with max_chunk=4 -> 3 chunks, last chunk
    # has 3 valid steps; B=20 -> two 16-row batch tiles).
    B2, T2 = 20, 11
    x2 = jax.random.normal(k_x2, (B2, T2, INPUT_SIZE), dtype=jnp.float32)
    out2 = jax.block_until_ready(
        anomaly_detection_forward(x2, packed, max_chunk=4))
    ref2 = reference_forward(x2, raw)
    err2 = float(jnp.max(jnp.abs(out2 - ref2)))
    assert jnp.allclose(out2, ref2, atol=2e-2, rtol=2e-2), err2

    print("KERNEL_OK")
</pallas_src>

<mosaic_0001>
module attributes {stable_mosaic.version = 11 : i64} {
  func.func @lstm_kernel(%arg0: i32, %arg1: i32, %arg2: memref<8x8x64xbf16, #tpu.memory_space<vmem>>, %arg3: memref<128x256xbf16, #tpu.memory_space<vmem>>, %arg4: memref<1x256xf32, #tpu.memory_space<vmem>>, %arg5: memref<128x256xbf16, #tpu.memory_space<vmem>>, %arg6: memref<1x256xf32, #tpu.memory_space<vmem>>, %arg7: memref<64x1xf32, #tpu.memory_space<vmem>>, %arg8: memref<1x1xf32, #tpu.memory_space<vmem>>, %arg9: memref<8x1xf32, #tpu.memory_space<vmem>>, %arg10: memref<8x128xf32, #tpu.memory_space<vmem>>, %arg11: memref<8x128xf32, #tpu.memory_space<vmem>>) attributes {dimension_semantics = [#tpu.dimension_semantics<parallel>, #tpu.dimension_semantics<arbitrary>], iteration_bounds = array<i64: 1, 1>, scalar_prefetch = 0 : i64, scratch_operands = 2 : i64, tpu.core_type = #tpu.core_type<tc>, window_params = [{transform_indices = @transform_0, window_bounds = array<i64: 8, 8, 64>}, {pipeline_mode = #tpu.pipeline_mode<synchronous>, transform_indices = @transform_1, window_bounds = array<i64: 128, 256>}, {pipeline_mode = #tpu.pipeline_mode<synchronous>, transform_indices = @transform_2, window_bounds = array<i64: 1, 256>}, {pipeline_mode = #tpu.pipeline_mode<synchronous>, transform_indices = @transform_3, window_bounds = array<i64: 128, 256>}, {pipeline_mode = #tpu.pipeline_mode<synchronous>, transform_indices = @transform_4, window_bounds = array<i64: 1, 256>}, {pipeline_mode = #tpu.pipeline_mode<synchronous>, transform_indices = @transform_5, window_bounds = array<i64: 64, 1>}, {pipeline_mode = #tpu.pipeline_mode<synchronous>, transform_indices = @transform_6, window_bounds = array<i64: 1, 1>}, {transform_indices = @transform_7, window_bounds = array<i64: 8, 1>}]} {
    %c0_i32 = arith.constant 0 : i32
    %0 = arith.cmpi eq, %arg1, %c0_i32 : i32
    %1 = arith.extui %0 : i1 to i32
    %c0_i32_0 = arith.constant 0 : i32
    %2 = arith.cmpi ne, %1, %c0_i32_0 : i32
    scf.if %2 {
      %cst_134 = arith.constant 0.000000e+00 : f32
      %440 = vector.broadcast %cst_134 : f32 to vector<8x128xf32>
      %c0_135 = arith.constant 0 : index
      %c0_136 = arith.constant 0 : index
      %441 = vector.load %arg10[%c0_135, %c0_136] : memref<8x128xf32, #tpu.memory_space<vmem>>, vector<8x128xf32>
      tpu.vector_store %arg10[%c0_135, %c0_136], %440 {strides = array<i32>} : memref<8x128xf32, #tpu.memory_space<vmem>>, vector<8x128xf32>,
      %cst_137 = arith.constant 0.000000e+00 : f32
      %442 = vector.broadcast %cst_137 : f32 to vector<8x128xf32>
      %c0_138 = arith.constant 0 : index
      %c0_139 = arith.constant 0 : index
      %443 = vector.load %arg11[%c0_138, %c0_139] : memref<8x128xf32, #tpu.memory_space<vmem>>, vector<8x128xf32>
      tpu.vector_store %arg11[%c0_138, %c0_139], %442 {strides = array<i32>} : memref<8x128xf32, #tpu.memory_space<vmem>>, vector<8x128xf32>,
    } else {
    }
    %c0 = arith.constant 0 : index
    %c0_1 = arith.constant 0 : index
    %3 = vector.load %arg4[%c0, %c0_1] : memref<1x256xf32, #tpu.memory_space<vmem>>, vector<1x256xf32>
    %c0_2 = arith.constant 0 : index
    %c0_3 = arith.constant 0 : index
    %4 = vector.load %arg6[%c0_2, %c0_3] : memref<1x256xf32, #tpu.memory_space<vmem>>, vector<1x256xf32>
    %c0_4 = arith.constant 0 : index
    %c0_5 = arith.constant 0 : index
    %5 = vector.load %arg10[%c0_4, %c0_5] : memref<8x128xf32, #tpu.memory_space<vmem>>, vector<8x128xf32>
    %c0_6 = arith.constant 0 : index
    %c0_7 = arith.constant 0 : index
    %6 = vector.load %arg11[%c0_6, %c0_7] : memref<8x128xf32, #tpu.memory_space<vmem>>, vector<8x128xf32>
    %7 = vector.extract_strided_slice %5 {offsets = [0, 0], sizes = [8, 64], strides = [1, 1]} : vector<8x128xf32> to vector<8x64xf32>
    %8 = vector.extract_strided_slice %5 {offsets = [0, 64], sizes = [8, 64], strides = [1, 1]} : vector<8x128xf32> to vector<8x64xf32>
    %9 = vector.extract_strided_slice %6 {offsets = [0, 0], sizes = [8, 64], strides = [1, 1]} : vector<8x128xf32> to vector<8x64xf32>
    %10 = vector.extract_strided_slice %6 {offsets = [0, 64], sizes = [8, 64], strides = [1, 1]} : vector<8x128xf32> to vector<8x64xf32>
    %c0_8 = arith.constant 0 : index
    %c0_9 = arith.constant 0 : index
    %c0_10 = arith.constant 0 : index
    %11 = vector.load %arg2[%c0_8, %c0_9, %c0_10] : memref<8x8x64xbf16, #tpu.memory_space<vmem>>, vector<1x8x64xbf16>
    %12 = vector.shape_cast %11 : vector<1x8x64xbf16> to vector<8x64xbf16>
    %13 = arith.truncf %7 : vector<8x64xf32> to vector<8x64xbf16>
    %14 = tpu.concatenate %12, %13 in 1 : vector<8x64xbf16>, vector<8x64xbf16> -> vector<8x128xbf16>
    %c0_11 = arith.constant 0 : index
    %c0_12 = arith.constant 0 : index
    %15 = vector.load %arg3[%c0_11, %c0_12] : memref<128x256xbf16, #tpu.memory_space<vmem>>, vector<128x256xbf16>
    %cst = arith.constant dense<0.000000e+00> : vector<8x256xf32>
    %16 = tpu.matmul %14, %15, %cst {dimension_numbers = #tpu.dot_dimension_numbers<[1], [0], [0], [1], [0, 0, 1, 1], [], []>} : vector<8x128xbf16>, vector<128x256xbf16>, vector<8x256xf32> -> vector<8x256xf32>
    %17 = vector.broadcast %3 : vector<1x256xf32> to vector<8x256xf32>
    %18 = arith.addf %16, %17 : vector<8x256xf32>
    %19 = arith.negf %18 : vector<8x256xf32>
    %20 = math.exp %19 : vector<8x256xf32>
    %cst_13 = arith.constant 1.000000e+00 : f32
    %21 = vector.broadcast %cst_13 : f32 to vector<8x256xf32>
    %22 = arith.addf %21, %20 : vector<8x256xf32>
    %23 = arith.divf %21, %22 : vector<8x256xf32>
    %24 = vector.extract_strided_slice %23 {offsets = [0, 0], sizes = [8, 64], strides = [1, 1]} : vector<8x256xf32> to vector<8x64xf32>
    %25 = vector.extract_strided_slice %23 {offsets = [0, 64], sizes = [8, 64], strides = [1, 1]} : vector<8x256xf32> to vector<8x64xf32>
    %26 = vector.extract_strided_slice %23 {offsets = [0, 128], sizes = [8, 64], strides = [1, 1]} : vector<8x256xf32> to vector<8x64xf32>
    %27 = vector.extract_strided_slice %23 {offsets = [0, 192], sizes = [8, 64], strides = [1, 1]} : vector<8x256xf32> to vector<8x64xf32>
    %cst_14 = arith.constant 2.000000e+00 : f32
    %28 = vector.broadcast %cst_14 : f32 to vector<8x64xf32>
    %29 = arith.mulf %28, %27 : vector<8x64xf32>
    %cst_15 = arith.constant 1.000000e+00 : f32
    %30 = vector.broadcast %cst_15 : f32 to vector<8x64xf32>
    %31 = arith.subf %29, %30 : vector<8x64xf32>
    %32 = arith.mulf %25, %9 : vector<8x64xf32>
    %33 = arith.mulf %24, %31 : vector<8x64xf32>
    %34 = arith.addf %32, %33 : vector<8x64xf32>
    %35 = math.tanh %34 : vector<8x64xf32>
    %36 = arith.mulf %26, %35 : vector<8x64xf32>
    %c0_i32_16 = arith.constant 0 : i32
    %37 = arith.truncf %36 : vector<8x64xf32> to vector<8x64xbf16>
    %38 = arith.truncf %8 : vector<8x64xf32> to vector<8x64xbf16>
    %39 = tpu.concatenate %37, %38 in 1 : vector<8x64xbf16>, vector<8x64xbf16> -> vector<8x128xbf16>
    %c0_17 = arith.constant 0 : index
    %c0_18 = arith.constant 0 : index
    %40 = vector.load %arg5[%c0_17, %c0_18] : memref<128x256xbf16, #tpu.memory_space<vmem>>, vector<128x256xbf16>
    %cst_19 = arith.constant dense<0.000000e+00> : vector<8x256xf32>
    %41 = tpu.matmul %39, %40, %cst_19 {dimension_numbers = #tpu.dot_dimension_numbers<[1], [0], [0], [1], [0, 0, 1, 1], [], []>} : vector<8x128xbf16>, vector<128x256xbf16>, vector<8x256xf32> -> vector<8x256xf32>
    %42 = vector.broadcast %4 : vector<1x256xf32> to vector<8x256xf32>
    %43 = arith.addf %41, %42 : vector<8x256xf32>
    %44 = arith.negf %43 : vector<8x256xf32>
    %45 = math.exp %44 : vector<8x256xf32>
    %cst_20 = arith.constant 1.000000e+00 : f32
    %46 = vector.broadcast %cst_20 : f32 to vector<8x256xf32>
    %47 = arith.addf %46, %45 : vector<8x256xf32>
    %48 = arith.divf %46, %47 : vector<8x256xf32>
    %49 = vector.extract_strided_slice %48 {offsets = [0, 0], sizes = [8, 64], strides = [1, 1]} : vector<8x256xf32> to vector<8x64xf32>
    %50 = vector.extract_strided_slice %48 {offsets = [0, 64], sizes = [8, 64], strides = [1, 1]} : vector<8x256xf32> to vector<8x64xf32>
    %51 = vector.extract_strided_slice %48 {offsets = [0, 128], sizes = [8, 64], strides = [1, 1]} : vector<8x256xf32> to vector<8x64xf32>
    %52 = vector.extract_strided_slice %48 {offsets = [0, 192], sizes = [8, 64], strides = [1, 1]} : vector<8x256xf32> to vector<8x64xf32>
    %cst_21 = arith.constant 2.000000e+00 : f32
    %53 = vector.broadcast %cst_21 : f32 to vector<8x64xf32>
    %54 = arith.mulf %53, %52 : vector<8x64xf32>
    %cst_22 = arith.constant 1.000000e+00 : f32
    %55 = vector.broadcast %cst_22 : f32 to vector<8x64xf32>
    %56 = arith.subf %54, %55 : vector<8x64xf32>
    %57 = arith.mulf %50, %10 : vector<8x64xf32>
    %58 = arith.mulf %49, %56 : vector<8x64xf32>
    %59 = arith.addf %57, %58 : vector<8x64xf32>
    %60 = math.tanh %59 : vector<8x64xf32>
    %61 = arith.mulf %51, %60 : vector<8x64xf32>
    %c1_i32 = arith.constant 1 : i32
    %62 = arith.addi %c0_i32_16, %c1_i32 : i32
    %63 = arith.index_cast %62 : i32 to index
    %c0_23 = arith.constant 0 : index
    %c0_24 = arith.constant 0 : index
    %64 = vector.load %arg2[%63, %c0_23, %c0_24] : memref<8x8x64xbf16, #tpu.memory_space<vmem>>, vector<1x8x64xbf16>
    %65 = vector.shape_cast %64 : vector<1x8x64xbf16> to vector<8x64xbf16>
    %66 = arith.truncf %36 : vector<8x64xf32> to vector<8x64xbf16>
    %67 = tpu.concatenate %65, %66 in 1 : vector<8x64xbf16>, vector<8x64xbf16> -> vector<8x128xbf16>
    %c0_25 = arith.constant 0 : index
    %c0_26 = arith.constant 0 : index
    %68 = vector.load %arg3[%c0_25, %c0_26] : memref<128x256xbf16, #tpu.memory_space<vmem>>, vector<128x256xbf16>
    %cst_27 = arith.constant dense<0.000000e+00> : vector<8x256xf32>
    %69 = tpu.matmul %67, %68, %cst_27 {dimension_numbers = #tpu.dot_dimension_numbers<[1], [0], [0], [1], [0, 0, 1, 1], [], []>} : vector<8x128xbf16>, vector<128x256xbf16>, vector<8x256xf32> -> vector<8x256xf32>
    %70 = vector.broadcast %3 : vector<1x256xf32> to vector<8x256xf32>
    %71 = arith.addf %69, %70 : vector<8x256xf32>
    %72 = arith.negf %71 : vector<8x256xf32>
    %73 = math.exp %72 : vector<8x256xf32>
    %cst_28 = arith.constant 1.000000e+00 : f32
    %74 = vector.broadcast %cst_28 : f32 to vector<8x256xf32>
    %75 = arith.addf %74, %73 : vector<8x256xf32>
    %76 = arith.divf %74, %75 : vector<8x256xf32>
    %77 = vector.extract_strided_slice %76 {offsets = [0, 0], sizes = [8, 64], strides = [1, 1]} : vector<8x256xf32> to vector<8x64xf32>
    %78 = vector.extract_strided_slice %76 {offsets = [0, 64], sizes = [8, 64], strides = [1, 1]} : vector<8x256xf32> to vector<8x64xf32>
    %79 = vector.extract_strided_slice %76 {offsets = [0, 128], sizes = [8, 64], strides = [1, 1]} : vector<8x256xf32> to vector<8x64xf32>
    %80 = vector.extract_strided_slice %76 {offsets = [0, 192], sizes = [8, 64], strides = [1, 1]} : vector<8x256xf32> to vector<8x64xf32>
    %cst_29 = arith.constant 2.000000e+00 : f32
    %81 = vector.broadcast %cst_29 : f32 to vector<8x64xf32>
    %82 = arith.mulf %81, %80 : vector<8x64xf32>
    %cst_30 = arith.constant 1.000000e+00 : f32
    %83 = vector.broadcast %cst_30 : f32 to vector<8x64xf32>
    %84 = arith.subf %82, %83 : vector<8x64xf32>
    %85 = arith.mulf %78, %34 : vector<8x64xf32>
    %86 = arith.mulf %77, %84 : vector<8x64xf32>
    %87 = arith.addf %85, %86 : vector<8x64xf32>
    %88 = math.tanh %87 : vector<8x64xf32>
    %89 = arith.mulf %79, %88 : vector<8x64xf32>
    %c1_i32_31 = arith.constant 1 : i32
    %90 = arith.truncf %89 : vector<8x64xf32> to vector<8x64xbf16>
    %91 = arith.truncf %61 : vector<8x64xf32> to vector<8x64xbf16>
    %92 = tpu.concatenate %90, %91 in 1 : vector<8x64xbf16>, vector<8x64xbf16> -> vector<8x128xbf16>
    %c0_32 = arith.constant 0 : index
    %c0_33 = arith.constant 0 : index
    %93 = vector.load %arg5[%c0_32, %c0_33] : memref<128x256xbf16, #tpu.memory_space<vmem>>, vector<128x256xbf16>
    %cst_34 = arith.constant dense<0.000000e+00> : vector<8x256xf32>
    %94 = tpu.matmul %92, %93, %cst_34 {dimension_numbers = #tpu.dot_dimension_numbers<[1], [0], [0], [1], [0, 0, 1, 1], [], []>} : vector<8x128xbf16>, vector<128x256xbf16>, vector<8x256xf32> -> vector<8x256xf32>
    %95 = vector.broadcast %4 : vector<1x256xf32> to vector<8x256xf32>
    %96 = arith.addf %94, %95 : vector<8x256xf32>
    %97 = arith.negf %96 : vector<8x256xf32>
    %98 = math.exp %97 : vector<8x256xf32>
    %cst_35 = arith.constant 1.000000e+00 : f32
    %99 = vector.broadcast %cst_35 : f32 to vector<8x256xf32>
    %100 = arith.addf %99, %98 : vector<8x256xf32>
    %101 = arith.divf %99, %100 : vector<8x256xf32>
    %102 = vector.extract_strided_slice %101 {offsets = [0, 0], sizes = [8, 64], strides = [1, 1]} : vector<8x256xf32> to vector<8x64xf32>
    %103 = vector.extract_strided_slice %101 {offsets = [0, 64], sizes = [8, 64], strides = [1, 1]} : vector<8x256xf32> to vector<8x64xf32>
    %104 = vector.extract_strided_slice %101 {offsets = [0, 128], sizes = [8, 64], strides = [1, 1]} : vector<8x256xf32> to vector<8x64xf32>
    %105 = vector.extract_strided_slice %101 {offsets = [0, 192], sizes = [8, 64], strides = [1, 1]} : vector<8x256xf32> to vector<8x64xf32>
    %cst_36 = arith.constant 2.000000e+00 : f32
    %106 = vector.broadcast %cst_36 : f32 to vector<8x64xf32>
    %107 = arith.mulf %106, %105 : vector<8x64xf32>
    %cst_37 = arith.constant 1.000000e+00 : f32
    %108 = vector.broadcast %cst_37 : f32 to vector<8x64xf32>
    %109 = arith.subf %107, %108 : vector<8x64xf32>
    %110 = arith.mulf %103, %59 : vector<8x64xf32>
    %111 = arith.mulf %102, %109 : vector<8x64xf32>
    %112 = arith.addf %110, %111 : vector<8x64xf32>
    %113 = math.tanh %112 : vector<8x64xf32>
    %114 = arith.mulf %104, %113 : vector<8x64xf32>
    %c1_i32_38 = arith.constant 1 : i32
    %115 = arith.addi %c1_i32_31, %c1_i32_38 : i32
    %116 = arith.index_cast %115 : i32 to index
    %c0_39 = arith.constant 0 : index
    %c0_40 = arith.constant 0 : index
    %117 = vector.load %arg2[%116, %c0_39, %c0_40] : memref<8x8x64xbf16, #tpu.memory_space<vmem>>, vector<1x8x64xbf16>
    %118 = vector.shape_cast %117 : vector<1x8x64xbf16> to vector<8x64xbf16>
    %119 = arith.truncf %89 : vector<8x64xf32> to vector<8x64xbf16>
    %120 = tpu.concatenate %118, %119 in 1 : vector<8x64xbf16>, vector<8x64xbf16> -> vector<8x128xbf16>
    %c0_41 = arith.constant 0 : index
    %c0_42 = arith.constant 0 : index
    %121 = vector.load %arg3[%c0_41, %c0_42] : memref<128x256xbf16, #tpu.memory_space<vmem>>, vector<128x256xbf16>
    %cst_43 = arith.constant dense<0.000000e+00> : vector<8x256xf32>
    %122 = tpu.matmul %120, %121, %cst_43 {dimension_numbers = #tpu.dot_dimension_numbers<[1], [0], [0], [1], [0, 0, 1, 1], [], []>} : vector<8x128xbf16>, vector<128x256xbf16>, vector<8x256xf32> -> vector<8x256xf32>
    %123 = vector.broadcast %3 : vector<1x256xf32> to vector<8x256xf32>
    %124 = arith.addf %122, %123 : vector<8x256xf32>
    %125 = arith.negf %124 : vector<8x256xf32>
    %126 = math.exp %125 : vector<8x256xf32>
    %cst_44 = arith.constant 1.000000e+00 : f32
    %127 = vector.broadcast %cst_44 : f32 to vector<8x256xf32>
    %128 = arith.addf %127, %126 : vector<8x256xf32>
    %129 = arith.divf %127, %128 : vector<8x256xf32>
    %130 = vector.extract_strided_slice %129 {offsets = [0, 0], sizes = [8, 64], strides = [1, 1]} : vector<8x256xf32> to vector<8x64xf32>
    %131 = vector.extract_strided_slice %129 {offsets = [0, 64], sizes = [8, 64], strides = [1, 1]} : vector<8x256xf32> to vector<8x64xf32>
    %132 = vector.extract_strided_slice %129 {offsets = [0, 128], sizes = [8, 64], strides = [1, 1]} : vector<8x256xf32> to vector<8x64xf32>
    %133 = vector.extract_strided_slice %129 {offsets = [0, 192], sizes = [8, 64], strides = [1, 1]} : vector<8x256xf32> to vector<8x64xf32>
    %cst_45 = arith.constant 2.000000e+00 : f32
    %134 = vector.broadcast %cst_45 : f32 to vector<8x64xf32>
    %135 = arith.mulf %134, %133 : vector<8x64xf32>
    %cst_46 = arith.constant 1.000000e+00 : f32
    %136 = vector.broadcast %cst_46 : f32 to vector<8x64xf32>
    %137 = arith.subf %135, %136 : vector<8x64xf32>
    %138 = arith.mulf %131, %87 : vector<8x64xf32>
    %139 = arith.mulf %130, %137 : vector<8x64xf32>
    %140 = arith.addf %138, %139 : vector<8x64xf32>
    %141 = math.tanh %140 : vector<8x64xf32>
    %142 = arith.mulf %132, %141 : vector<8x64xf32>
    %c2_i32 = arith.constant 2 : i32
    %143 = arith.truncf %142 : vector<8x64xf32> to vector<8x64xbf16>
    %144 = arith.truncf %114 : vector<8x64xf32> to vector<8x64xbf16>
    %145 = tpu.concatenate %143, %144 in 1 : vector<8x64xbf16>, vector<8x64xbf16> -> vector<8x128xbf16>
    %c0_47 = arith.constant 0 : index
    %c0_48 = arith.constant 0 : index
    %146 = vector.load %arg5[%c0_47, %c0_48] : memref<128x256xbf16, #tpu.memory_space<vmem>>, vector<128x256xbf16>
    %cst_49 = arith.constant dense<0.000000e+00> : vector<8x256xf32>
    %147 = tpu.matmul %145, %146, %cst_49 {dimension_numbers = #tpu.dot_dimension_numbers<[1], [0], [0], [1], [0, 0, 1, 1], [], []>} : vector<8x128xbf16>, vector<128x256xbf16>, vector<8x256xf32> -> vector<8x256xf32>
    %148 = vector.broadcast %4 : vector<1x256xf32> to vector<8x256xf32>
    %149 = arith.addf %147, %148 : vector<8x256xf32>
    %150 = arith.negf %149 : vector<8x256xf32>
    %151 = math.exp %150 : vector<8x256xf32>
    %cst_50 = arith.constant 1.000000e+00 : f32
    %152 = vector.broadcast %cst_50 : f32 to vector<8x256xf32>
    %153 = arith.addf %152, %151 : vector<8x256xf32>
    %154 = arith.divf %152, %153 : vector<8x256xf32>
    %155 = vector.extract_strided_slice %154 {offsets = [0, 0], sizes = [8, 64], strides = [1, 1]} : vector<8x256xf32> to vector<8x64xf32>
    %156 = vector.extract_strided_slice %154 {offsets = [0, 64], sizes = [8, 64], strides = [1, 1]} : vector<8x256xf32> to vector<8x64xf32>
    %157 = vector.extract_strided_slice %154 {offsets = [0, 128], sizes = [8, 64], strides = [1, 1]} : vector<8x256xf32> to vector<8x64xf32>
    %158 = vector.extract_strided_slice %154 {offsets = [0, 192], sizes = [8, 64], strides = [1, 1]} : vector<8x256xf32> to vector<8x64xf32>
    %cst_51 = arith.constant 2.000000e+00 : f32
    %159 = vector.broadcast %cst_51 : f32 to vector<8x64xf32>
    %160 = arith.mulf %159, %158 : vector<8x64xf32>
    %cst_52 = arith.constant 1.000000e+00 : f32
    %161 = vector.broadcast %cst_52 : f32 to vector<8x64xf32>
    %162 = arith.subf %160, %161 : vector<8x64xf32>
    %163 = arith.mulf %156, %112 : vector<8x64xf32>
    %164 = arith.mulf %155, %162 : vector<8x64xf32>
    %165 = arith.addf %163, %164 : vector<8x64xf32>
    %166 = math.tanh %165 : vector<8x64xf32>
    %167 = arith.mulf %157, %166 : vector<8x64xf32>
    %c1_i32_53 = arith.constant 1 : i32
    %168 = arith.addi %c2_i32, %c1_i32_53 : i32
    %169 = arith.index_cast %168 : i32 to index
    %c0_54 = arith.constant 0 : index
    %c0_55 = arith.constant 0 : index
    %170 = vector.load %arg2[%169, %c0_54, %c0_55] : memref<8x8x64xbf16, #tpu.memory_space<vmem>>, vector<1x8x64xbf16>
    %171 = vector.shape_cast %170 : vector<1x8x64xbf16> to vector<8x64xbf16>
    %172 = arith.truncf %142 : vector<8x64xf32> to vector<8x64xbf16>
    %173 = tpu.concatenate %171, %172 in 1 : vector<8x64xbf16>, vector<8x64xbf16> -> vector<8x128xbf16>
    %c0_56 = arith.constant 0 : index
    %c0_57 = arith.constant 0 : index
    %174 = vector.load %arg3[%c0_56, %c0_57] : memref<128x256xbf16, #tpu.memory_space<vmem>>, vector<128x256xbf16>
    %cst_58 = arith.constant dense<0.000000e+00> : vector<8x256xf32>
    %175 = tpu.matmul %173, %174, %cst_58 {dimension_numbers = #tpu.dot_dimension_numbers<[1], [0], [0], [1], [0, 0, 1, 1], [], []>} : vector<8x128xbf16>, vector<128x256xbf16>, vector<8x256xf32> -> vector<8x256xf32>
    %176 = vector.broadcast %3 : vector<1x256xf32> to vector<8x256xf32>
    %177 = arith.addf %175, %176 : vector<8x256xf32>
    %178 = arith.negf %177 : vector<8x256xf32>
    %179 = math.exp %178 : vector<8x256xf32>
    %cst_59 = arith.constant 1.000000e+00 : f32
    %180 = vector.broadcast %cst_59 : f32 to vector<8x256xf32>
    %181 = arith.addf %180, %179 : vector<8x256xf32>
    %182 = arith.divf %180, %181 : vector<8x256xf32>
    %183 = vector.extract_strided_slice %182 {offsets = [0, 0], sizes = [8, 64], strides = [1, 1]} : vector<8x256xf32> to vector<8x64xf32>
    %184 = vector.extract_strided_slice %182 {offsets = [0, 64], sizes = [8, 64], strides = [1, 1]} : vector<8x256xf32> to vector<8x64xf32>
    %185 = vector.extract_strided_slice %182 {offsets = [0, 128], sizes = [8, 64], strides = [1, 1]} : vector<8x256xf32> to vector<8x64xf32>
    %186 = vector.extract_strided_slice %182 {offsets = [0, 192], sizes = [8, 64], strides = [1, 1]} : vector<8x256xf32> to vector<8x64xf32>
    %cst_60 = arith.constant 2.000000e+00 : f32
    %187 = vector.broadcast %cst_60 : f32 to vector<8x64xf32>
    %188 = arith.mulf %187, %186 : vector<8x64xf32>
    %cst_61 = arith.constant 1.000000e+00 : f32
    %189 = vector.broadcast %cst_61 : f32 to vector<8x64xf32>
    %190 = arith.subf %188, %189 : vector<8x64xf32>
    %191 = arith.mulf %184, %140 : vector<8x64xf32>
    %192 = arith.mulf %183, %190 : vector<8x64xf32>
    %193 = arith.addf %191, %192 : vector<8x64xf32>
    %194 = math.tanh %193 : vector<8x64xf32>
    %195 = arith.mulf %185, %194 : vector<8x64xf32>
    %c3_i32 = arith.constant 3 : i32
    %196 = arith.truncf %195 : vector<8x64xf32> to vector<8x64xbf16>
    %197 = arith.truncf %167 : vector<8x64xf32> to vector<8x64xbf16>
    %198 = tpu.concatenate %196, %197 in 1 : vector<8x64xbf16>, vector<8x64xbf16> -> vector<8x128xbf16>
    %c0_62 = arith.constant 0 : index
    %c0_63 = arith.constant 0 : index
    %199 = vector.load %arg5[%c0_62, %c0_63] : memref<128x256xbf16, #tpu.memory_space<vmem>>, vector<128x256xbf16>
    %cst_64 = arith.constant dense<0.000000e+00> : vector<8x256xf32>
    %200 = tpu.matmul %198, %199, %cst_64 {dimension_numbers = #tpu.dot_dimension_numbers<[1], [0], [0], [1], [0, 0, 1, 1], [], []>} : vector<8x128xbf16>, vector<128x256xbf16>, vector<8x256xf32> -> vector<8x256xf32>
    %201 = vector.broadcast %4 : vector<1x256xf32> to vector<8x256xf32>
    %202 = arith.addf %200, %201 : vector<8x256xf32>
    %203 = arith.negf %202 : vector<8x256xf32>
    %204 = math.exp %203 : vector<8x256xf32>
    %cst_65 = arith.constant 1.000000e+00 : f32
    %205 = vector.broadcast %cst_65 : f32 to vector<8x256xf32>
    %206 = arith.addf %205, %204 : vector<8x256xf32>
    %207 = arith.divf %205, %206 : vector<8x256xf32>
    %208 = vector.extract_strided_slice %207 {offsets = [0, 0], sizes = [8, 64], strides = [1, 1]} : vector<8x256xf32> to vector<8x64xf32>
    %209 = vector.extract_strided_slice %207 {offsets = [0, 64], sizes = [8, 64], strides = [1, 1]} : vector<8x256xf32> to vector<8x64xf32>
    %210 = vector.extract_strided_slice %207 {offsets = [0, 128], sizes = [8, 64], strides = [1, 1]} : vector<8x256xf32> to vector<8x64xf32>
    %211 = vector.extract_strided_slice %207 {offsets = [0, 192], sizes = [8, 64], strides = [1, 1]} : vector<8x256xf32> to vector<8x64xf32>
    %cst_66 = arith.constant 2.000000e+00 : f32
    %212 = vector.broadcast %cst_66 : f32 to vector<8x64xf32>
    %213 = arith.mulf %212, %211 : vector<8x64xf32>
    %cst_67 = arith.constant 1.000000e+00 : f32
    %214 = vector.broadcast %cst_67 : f32 to vector<8x64xf32>
    %215 = arith.subf %213, %214 : vector<8x64xf32>
    %216 = arith.mulf %209, %165 : vector<8x64xf32>
    %217 = arith.mulf %208, %215 : vector<8x64xf32>
    %218 = arith.addf %216, %217 : vector<8x64xf32>
    %219 = math.tanh %218 : vector<8x64xf32>
    %220 = arith.mulf %210, %219 : vector<8x64xf32>
    %c1_i32_68 = arith.constant 1 : i32
    %221 = arith.addi %c3_i32, %c1_i32_68 : i32
    %222 = arith.index_cast %221 : i32 to index
    %c0_69 = arith.constant 0 : index
    %c0_70 = arith.constant 0 : index
    %223 = vector.load %arg2[%222, %c0_69, %c0_70] : memref<8x8x64xbf16, #tpu.memory_space<vmem>>, vector<1x8x64xbf16>
    %224 = vector.shape_cast %223 : vector<1x8x64xbf16> to vector<8x64xbf16>
    %225 = arith.truncf %195 : vector<8x64xf32> to vector<8x64xbf16>
    %226 = tpu.concatenate %224, %225 in 1 : vector<8x64xbf16>, vector<8x64xbf16> -> vector<8x128xbf16>
    %c0_71 = arith.constant 0 : index
    %c0_72 = arith.constant 0 : index
    %227 = vector.load %arg3[%c0_71, %c0_72] : memref<128x256xbf16, #tpu.memory_space<vmem>>, vector<128x256xbf16>
    %cst_73 = arith.constant dense<0.000000e+00> : vector<8x256xf32>
    %228 = tpu.matmul %226, %227, %cst_73 {dimension_numbers = #tpu.dot_dimension_numbers<[1], [0], [0], [1], [0, 0, 1, 1], [], []>} : vector<8x128xbf16>, vector<128x256xbf16>, vector<8x256xf32> -> vector<8x256xf32>
    %229 = vector.broadcast %3 : vector<1x256xf32> to vector<8x256xf32>
    %230 = arith.addf %228, %229 : vector<8x256xf32>
    %231 = arith.negf %230 : vector<8x256xf32>
    %232 = math.exp %231 : vector<8x256xf32>
    %cst_74 = arith.constant 1.000000e+00 : f32
    %233 = vector.broadcast %cst_74 : f32 to vector<8x256xf32>
    %234 = arith.addf %233, %232 : vector<8x256xf32>
    %235 = arith.divf %233, %234 : vector<8x256xf32>
    %236 = vector.extract_strided_slice %235 {offsets = [0, 0], sizes = [8, 64], strides = [1, 1]} : vector<8x256xf32> to vector<8x64xf32>
    %237 = vector.extract_strided_slice %235 {offsets = [0, 64], sizes = [8, 64], strides = [1, 1]} : vector<8x256xf32> to vector<8x64xf32>
    %238 = vector.extract_strided_slice %235 {offsets = [0, 128], sizes = [8, 64], strides = [1, 1]} : vector<8x256xf32> to vector<8x64xf32>
    %239 = vector.extract_strided_slice %235 {offsets = [0, 192], sizes = [8, 64], strides = [1, 1]} : vector<8x256xf32> to vector<8x64xf32>
    %cst_75 = arith.constant 2.000000e+00 : f32
    %240 = vector.broadcast %cst_75 : f32 to vector<8x64xf32>
    %241 = arith.mulf %240, %239 : vector<8x64xf32>
    %cst_76 = arith.constant 1.000000e+00 : f32
    %242 = vector.broadcast %cst_76 : f32 to vector<8x64xf32>
    %243 = arith.subf %241, %242 : vector<8x64xf32>
    %244 = arith.mulf %237, %193 : vector<8x64xf32>
    %245 = arith.mulf %236, %243 : vector<8x64xf32>
    %246 = arith.addf %244, %245 : vector<8x64xf32>
    %247 = math.tanh %246 : vector<8x64xf32>
    %248 = arith.mulf %238, %247 : vector<8x64xf32>
    %c4_i32 = arith.constant 4 : i32
    %249 = arith.truncf %248 : vector<8x64xf32> to vector<8x64xbf16>
    %250 = arith.truncf %220 : vector<8x64xf32> to vector<8x64xbf16>
    %251 = tpu.concatenate %249, %250 in 1 : vector<8x64xbf16>, vector<8x64xbf16> -> vector<8x128xbf16>
    %c0_77 = arith.constant 0 : index
    %c0_78 = arith.constant 0 : index
    %252 = vector.load %arg5[%c0_77, %c0_78] : memref<128x256xbf16, #tpu.memory_space<vmem>>, vector<128x256xbf16>
    %cst_79 = arith.constant dense<0.000000e+00> : vector<8x256xf32>
    %253 = tpu.matmul %251, %252, %cst_79 {dimension_numbers = #tpu.dot_dimension_numbers<[1], [0], [0], [1], [0, 0, 1, 1], [], []>} : vector<8x128xbf16>, vector<128x256xbf16>, vector<8x256xf32> -> vector<8x256xf32>
    %254 = vector.broadcast %4 : vector<1x256xf32> to vector<8x256xf32>
    %255 = arith.addf %253, %254 : vector<8x256xf32>
    %256 = arith.negf %255 : vector<8x256xf32>
    %257 = math.exp %256 : vector<8x256xf32>
    %cst_80 = arith.constant 1.000000e+00 : f32
    %258 = vector.broadcast %cst_80 : f32 to vector<8x256xf32>
    %259 = arith.addf %258, %257 : vector<8x256xf32>
    %260 = arith.divf %258, %259 : vector<8x256xf32>
    %261 = vector.extract_strided_slice %260 {offsets = [0, 0], sizes = [8, 64], strides = [1, 1]} : vector<8x256xf32> to vector<8x64xf32>
    %262 = vector.extract_strided_slice %260 {offsets = [0, 64], sizes = [8, 64], strides = [1, 1]} : vector<8x256xf32> to vector<8x64xf32>
    %263 = vector.extract_strided_slice %260 {offsets = [0, 128], sizes = [8, 64], strides = [1, 1]} : vector<8x256xf32> to vector<8x64xf32>
    %264 = vector.extract_strided_slice %260 {offsets = [0, 192], sizes = [8, 64], strides = [1, 1]} : vector<8x256xf32> to vector<8x64xf32>
    %cst_81 = arith.constant 2.000000e+00 : f32
    %265 = vector.broadcast %cst_81 : f32 to vector<8x64xf32>
    %266 = arith.mulf %265, %264 : vector<8x64xf32>
    %cst_82 = arith.constant 1.000000e+00 : f32
    %267 = vector.broadcast %cst_82 : f32 to vector<8x64xf32>
    %268 = arith.subf %266, %267 : vector<8x64xf32>
    %269 = arith.mulf %262, %218 : vector<8x64xf32>
    %270 = arith.mulf %261, %268 : vector<8x64xf32>
    %271 = arith.addf %269, %270 : vector<8x64xf32>
    %272 = math.tanh %271 : vector<8x64xf32>
    %273 = arith.mulf %263, %272 : vector<8x64xf32>
    %c1_i32_83 = arith.constant 1 : i32
    %274 = arith.addi %c4_i32, %c1_i32_83 : i32
    %275 = arith.index_cast %274 : i32 to index
    %c0_84 = arith.constant 0 : index
    %c0_85 = arith.constant 0 : index
    %276 = vector.load %arg2[%275, %c0_84, %c0_85] : memref<8x8x64xbf16, #tpu.memory_space<vmem>>, vector<1x8x64xbf16>
    %277 = vector.shape_cast %276 : vector<1x8x64xbf16> to vector<8x64xbf16>
    %278 = arith.truncf %248 : vector<8x64xf32> to vector<8x64xbf16>
    %279 = tpu.concatenate %277, %278 in 1 : vector<8x64xbf16>, vector<8x64xbf16> -> vector<8x128xbf16>
    %c0_86 = arith.constant 0 : index
    %c0_87 = arith.constant 0 : index
    %280 = vector.load %arg3[%c0_86, %c0_87] : memref<128x256xbf16, #tpu.memory_space<vmem>>, vector<128x256xbf16>
    %cst_88 = arith.constant dense<0.000000e+00> : vector<8x256xf32>
    %281 = tpu.matmul %279, %280, %cst_88 {dimension_numbers = #tpu.dot_dimension_numbers<[1], [0], [0], [1], [0, 0, 1, 1], [], []>} : vector<8x128xbf16>, vector<128x256xbf16>, vector<8x256xf32> -> vector<8x256xf32>
    %282 = vector.broadcast %3 : vector<1x256xf32> to vector<8x256xf32>
    %283 = arith.addf %281, %282 : vector<8x256xf32>
    %284 = arith.negf %283 : vector<8x256xf32>
    %285 = math.exp %284 : vector<8x256xf32>
    %cst_89 = arith.constant 1.000000e+00 : f32
    %286 = vector.broadcast %cst_89 : f32 to vector<8x256xf32>
    %287 = arith.addf %286, %285 : vector<8x256xf32>
    %288 = arith.divf %286, %287 : vector<8x256xf32>
    %289 = vector.extract_strided_slice %288 {offsets = [0, 0], sizes = [8, 64], strides = [1, 1]} : vector<8x256xf32> to vector<8x64xf32>
    %290 = vector.extract_strided_slice %288 {offsets = [0, 64], sizes = [8, 64], strides = [1, 1]} : vector<8x256xf32> to vector<8x64xf32>
    %291 = vector.extract_strided_slice %288 {offsets = [0, 128], sizes = [8, 64], strides = [1, 1]} : vector<8x256xf32> to vector<8x64xf32>
    %292 = vector.extract_strided_slice %288 {offsets = [0, 192], sizes = [8, 64], strides = [1, 1]} : vector<8x256xf32> to vector<8x64xf32>
    %cst_90 = arith.constant 2.000000e+00 : f32
    %293 = vector.broadcast %cst_90 : f32 to vector<8x64xf32>
    %294 = arith.mulf %293, %292 : vector<8x64xf32>
    %cst_91 = arith.constant 1.000000e+00 : f32
    %295 = vector.broadcast %cst_91 : f32 to vector<8x64xf32>
    %296 = arith.subf %294, %295 : vector<8x64xf32>
    %297 = arith.mulf %290, %246 : vector<8x64xf32>
    %298 = arith.mulf %289, %296 : vector<8x64xf32>
    %299 = arith.addf %297, %298 : vector<8x64xf32>
    %300 = math.tanh %299 : vector<8x64xf32>
    %301 = arith.mulf %291, %300 : vector<8x64xf32>
    %c5_i32 = arith.constant 5 : i32
    %302 = arith.truncf %301 : vector<8x64xf32> to vector<8x64xbf16>
    %303 = arith.truncf %273 : vector<8x64xf32> to vector<8x64xbf16>
    %304 = tpu.concatenate %302, %303 in 1 : vector<8x64xbf16>, vector<8x64xbf16> -> vector<8x128xbf16>
    %c0_92 = arith.constant 0 : index
    %c0_93 = arith.constant 0 : index
    %305 = vector.load %arg5[%c0_92, %c0_93] : memref<128x256xbf16, #tpu.memory_space<vmem>>, vector<128x256xbf16>
    %cst_94 = arith.constant dense<0.000000e+00> : vector<8x256xf32>
    %306 = tpu.matmul %304, %305, %cst_94 {dimension_numbers = #tpu.dot_dimension_numbers<[1], [0], [0], [1], [0, 0, 1, 1], [], []>} : vector<8x128xbf16>, vector<128x256xbf16>, vector<8x256xf32> -> vector<8x256xf32>
    %307 = vector.broadcast %4 : vector<1x256xf32> to vector<8x256xf32>
    %308 = arith.addf %306, %307 : vector<8x256xf32>
    %309 = arith.negf %308 : vector<8x256xf32>
    %310 = math.exp %309 : vector<8x256xf32>
    %cst_95 = arith.constant 1.000000e+00 : f32
    %311 = vector.broadcast %cst_95 : f32 to vector<8x256xf32>
    %312 = arith.addf %311, %310 : vector<8x256xf32>
    %313 = arith.divf %311, %312 : vector<8x256xf32>
    %314 = vector.extract_strided_slice %313 {offsets = [0, 0], sizes = [8, 64], strides = [1, 1]} : vector<8x256xf32> to vector<8x64xf32>
    %315 = vector.extract_strided_slice %313 {offsets = [0, 64], sizes = [8, 64], strides = [1, 1]} : vector<8x256xf32> to vector<8x64xf32>
    %316 = vector.extract_strided_slice %313 {offsets = [0, 128], sizes = [8, 64], strides = [1, 1]} : vector<8x256xf32> to vector<8x64xf32>
    %317 = vector.extract_strided_slice %313 {offsets = [0, 192], sizes = [8, 64], strides = [1, 1]} : vector<8x256xf32> to vector<8x64xf32>
    %cst_96 = arith.constant 2.000000e+00 : f32
    %318 = vector.broadcast %cst_96 : f32 to vector<8x64xf32>
    %319 = arith.mulf %318, %317 : vector<8x64xf32>
    %cst_97 = arith.constant 1.000000e+00 : f32
    %320 = vector.broadcast %cst_97 : f32 to vector<8x64xf32>
    %321 = arith.subf %319, %320 : vector<8x64xf32>
    %322 = arith.mulf %315, %271 : vector<8x64xf32>
    %323 = arith.mulf %314, %321 : vector<8x64xf32>
    %324 = arith.addf %322, %323 : vector<8x64xf32>
    %325 = math.tanh %324 : vector<8x64xf32>
    %326 = arith.mulf %316, %325 : vector<8x64xf32>
    %c1_i32_98 = arith.constant 1 : i32
    %327 = arith.addi %c5_i32, %c1_i32_98 : i32
    %328 = arith.index_cast %327 : i32 to index
    %c0_99 = arith.constant 0 : index
    %c0_100 = arith.constant 0 : index
    %329 = vector.load %arg2[%328, %c0_99, %c0_100] : memref<8x8x64xbf16, #tpu.memory_space<vmem>>, vector<1x8x64xbf16>
    %330 = vector.shape_cast %329 : vector<1x8x64xbf16> to vector<8x64xbf16>
    %331 = arith.truncf %301 : vector<8x64xf32> to vector<8x64xbf16>
    %332 = tpu.concatenate %330, %331 in 1 : vector<8x64xbf16>, vector<8x64xbf16> -> vector<8x128xbf16>
    %c0_101 = arith.constant 0 : index
    %c0_102 = arith.constant 0 : index
    %333 = vector.load %arg3[%c0_101, %c0_102] : memref<128x256xbf16, #tpu.memory_space<vmem>>, vector<128x256xbf16>
    %cst_103 = arith.constant dense<0.000000e+00> : vector<8x256xf32>
    %334 = tpu.matmul %332, %333, %cst_103 {dimension_numbers = #tpu.dot_dimension_numbers<[1], [0], [0], [1], [0, 0, 1, 1], [], []>} : vector<8x128xbf16>, vector<128x256xbf16>, vector<8x256xf32> -> vector<8x256xf32>
    %335 = vector.broadcast %3 : vector<1x256xf32> to vector<8x256xf32>
    %336 = arith.addf %334, %335 : vector<8x256xf32>
    %337 = arith.negf %336 : vector<8x256xf32>
    %338 = math.exp %337 : vector<8x256xf32>
    %cst_104 = arith.constant 1.000000e+00 : f32
    %339 = vector.broadcast %cst_104 : f32 to vector<8x256xf32>
    %340 = arith.addf %339, %338 : vector<8x256xf32>
    %341 = arith.divf %339, %340 : vector<8x256xf32>
    %342 = vector.extract_strided_slice %341 {offsets = [0, 0], sizes = [8, 64], strides = [1, 1]} : vector<8x256xf32> to vector<8x64xf32>
    %343 = vector.extract_strided_slice %341 {offsets = [0, 64], sizes = [8, 64], strides = [1, 1]} : vector<8x256xf32> to vector<8x64xf32>
    %344 = vector.extract_strided_slice %341 {offsets = [0, 128], sizes = [8, 64], strides = [1, 1]} : vector<8x256xf32> to vector<8x64xf32>
    %345 = vector.extract_strided_slice %341 {offsets = [0, 192], sizes = [8, 64], strides = [1, 1]} : vector<8x256xf32> to vector<8x64xf32>
    %cst_105 = arith.constant 2.000000e+00 : f32
    %346 = vector.broadcast %cst_105 : f32 to vector<8x64xf32>
    %347 = arith.mulf %346, %345 : vector<8x64xf32>
    %cst_106 = arith.constant 1.000000e+00 : f32
    %348 = vector.broadcast %cst_106 : f32 to vector<8x64xf32>
    %349 = arith.subf %347, %348 : vector<8x64xf32>
    %350 = arith.mulf %343, %299 : vector<8x64xf32>
    %351 = arith.mulf %342, %349 : vector<8x64xf32>
    %352 = arith.addf %350, %351 : vector<8x64xf32>
    %353 = math.tanh %352 : vector<8x64xf32>
    %354 = arith.mulf %344, %353 : vector<8x64xf32>
    %c6_i32 = arith.constant 6 : i32
    %355 = arith.truncf %354 : vector<8x64xf32> to vector<8x64xbf16>
    %356 = arith.truncf %326 : vector<8x64xf32> to vector<8x64xbf16>
    %357 = tpu.concatenate %355, %356 in 1 : vector<8x64xbf16>, vector<8x64xbf16> -> vector<8x128xbf16>
    %c0_107 = arith.constant 0 : index
    %c0_108 = arith.constant 0 : index
    %358 = vector.load %arg5[%c0_107, %c0_108] : memref<128x256xbf16, #tpu.memory_space<vmem>>, vector<128x256xbf16>
    %cst_109 = arith.constant dense<0.000000e+00> : vector<8x256xf32>
    %359 = tpu.matmul %357, %358, %cst_109 {dimension_numbers = #tpu.dot_dimension_numbers<[1], [0], [0], [1], [0, 0, 1, 1], [], []>} : vector<8x128xbf16>, vector<128x256xbf16>, vector<8x256xf32> -> vector<8x256xf32>
    %360 = vector.broadcast %4 : vector<1x256xf32> to vector<8x256xf32>
    %361 = arith.addf %359, %360 : vector<8x256xf32>
    %362 = arith.negf %361 : vector<8x256xf32>
    %363 = math.exp %362 : vector<8x256xf32>
    %cst_110 = arith.constant 1.000000e+00 : f32
    %364 = vector.broadcast %cst_110 : f32 to vector<8x256xf32>
    %365 = arith.addf %364, %363 : vector<8x256xf32>
    %366 = arith.divf %364, %365 : vector<8x256xf32>
    %367 = vector.extract_strided_slice %366 {offsets = [0, 0], sizes = [8, 64], strides = [1, 1]} : vector<8x256xf32> to vector<8x64xf32>
    %368 = vector.extract_strided_slice %366 {offsets = [0, 64], sizes = [8, 64], strides = [1, 1]} : vector<8x256xf32> to vector<8x64xf32>
    %369 = vector.extract_strided_slice %366 {offsets = [0, 128], sizes = [8, 64], strides = [1, 1]} : vector<8x256xf32> to vector<8x64xf32>
    %370 = vector.extract_strided_slice %366 {offsets = [0, 192], sizes = [8, 64], strides = [1, 1]} : vector<8x256xf32> to vector<8x64xf32>
    %cst_111 = arith.constant 2.000000e+00 : f32
    %371 = vector.broadcast %cst_111 : f32 to vector<8x64xf32>
    %372 = arith.mulf %371, %370 : vector<8x64xf32>
    %cst_112 = arith.constant 1.000000e+00 : f32
    %373 = vector.broadcast %cst_112 : f32 to vector<8x64xf32>
    %374 = arith.subf %372, %373 : vector<8x64xf32>
    %375 = arith.mulf %368, %324 : vector<8x64xf32>
    %376 = arith.mulf %367, %374 : vector<8x64xf32>
    %377 = arith.addf %375, %376 : vector<8x64xf32>
    %378 = math.tanh %377 : vector<8x64xf32>
    %379 = arith.mulf %369, %378 : vector<8x64xf32>
    %c1_i32_113 = arith.constant 1 : i32
    %380 = arith.addi %c6_i32, %c1_i32_113 : i32
    %381 = arith.index_cast %380 : i32 to index
    %c0_114 = arith.constant 0 : index
    %c0_115 = arith.constant 0 : index
    %382 = vector.load %arg2[%381, %c0_114, %c0_115] : memref<8x8x64xbf16, #tpu.memory_space<vmem>>, vector<1x8x64xbf16>
    %383 = vector.shape_cast %382 : vector<1x8x64xbf16> to vector<8x64xbf16>
    %384 = arith.truncf %354 : vector<8x64xf32> to vector<8x64xbf16>
    %385 = tpu.concatenate %383, %384 in 1 : vector<8x64xbf16>, vector<8x64xbf16> -> vector<8x128xbf16>
    %c0_116 = arith.constant 0 : index
    %c0_117 = arith.constant 0 : index
    %386 = vector.load %arg3[%c0_116, %c0_117] : memref<128x256xbf16, #tpu.memory_space<vmem>>, vector<128x256xbf16>
    %cst_118 = arith.constant dense<0.000000e+00> : vector<8x256xf32>
    %387 = tpu.matmul %385, %386, %cst_118 {dimension_numbers = #tpu.dot_dimension_numbers<[1], [0], [0], [1], [0, 0, 1, 1], [], []>} : vector<8x128xbf16>, vector<128x256xbf16>, vector<8x256xf32> -> vector<8x256xf32>
    %388 = vector.broadcast %3 : vector<1x256xf32> to vector<8x256xf32>
    %389 = arith.addf %387, %388 : vector<8x256xf32>
    %390 = arith.negf %389 : vector<8x256xf32>
    %391 = math.exp %390 : vector<8x256xf32>
    %cst_119 = arith.constant 1.000000e+00 : f32
    %392 = vector.broadcast %cst_119 : f32 to vector<8x256xf32>
    %393 = arith.addf %392, %391 : vector<8x256xf32>
    %394 = arith.divf %392, %393 : vector<8x256xf32>
    %395 = vector.extract_strided_slice %394 {offsets = [0, 0], sizes = [8, 64], strides = [1, 1]} : vector<8x256xf32> to vector<8x64xf32>
    %396 = vector.extract_strided_slice %394 {offsets = [0, 64], sizes = [8, 64], strides = [1, 1]} : vector<8x256xf32> to vector<8x64xf32>
    %397 = vector.extract_strided_slice %394 {offsets = [0, 128], sizes = [8, 64], strides = [1, 1]} : vector<8x256xf32> to vector<8x64xf32>
    %398 = vector.extract_strided_slice %394 {offsets = [0, 192], sizes = [8, 64], strides = [1, 1]} : vector<8x256xf32> to vector<8x64xf32>
    %cst_120 = arith.constant 2.000000e+00 : f32
    %399 = vector.broadcast %cst_120 : f32 to vector<8x64xf32>
    %400 = arith.mulf %399, %398 : vector<8x64xf32>
    %cst_121 = arith.constant 1.000000e+00 : f32
    %401 = vector.broadcast %cst_121 : f32 to vector<8x64xf32>
    %402 = arith.subf %400, %401 : vector<8x64xf32>
    %403 = arith.mulf %396, %352 : vector<8x64xf32>
    %404 = arith.mulf %395, %402 : vector<8x64xf32>
    %405 = arith.addf %403, %404 : vector<8x64xf32>
    %406 = math.tanh %405 : vector<8x64xf32>
    %407 = arith.mulf %397, %406 : vector<8x64xf32>
    %c7_i32 = arith.constant 7 : i32
    %408 = arith.truncf %407 : vector<8x64xf32> to vector<8x64xbf16>
    %409 = arith.truncf %379 : vector<8x64xf32> to vector<8x64xbf16>
    %410 = tpu.concatenate %408, %409 in 1 : vector<8x64xbf16>, vector<8x64xbf16> -> vector<8x128xbf16>
    %c0_122 = arith.constant 0 : index
    %c0_123 = arith.constant 0 : index
    %411 = vector.load %arg5[%c0_122, %c0_123] : memref<128x256xbf16, #tpu.memory_space<vmem>>, vector<128x256xbf16>
    %cst_124 = arith.constant dense<0.000000e+00> : vector<8x256xf32>
    %412 = tpu.matmul %410, %411, %cst_124 {dimension_numbers = #tpu.dot_dimension_numbers<[1], [0], [0], [1], [0, 0, 1, 1], [], []>} : vector<8x128xbf16>, vector<128x256xbf16>, vector<8x256xf32> -> vector<8x256xf32>
    %413 = vector.broadcast %4 : vector<1x256xf32> to vector<8x256xf32>
    %414 = arith.addf %412, %413 : vector<8x256xf32>
    %415 = arith.negf %414 : vector<8x256xf32>
    %416 = math.exp %415 : vector<8x256xf32>
    %cst_125 = arith.constant 1.000000e+00 : f32
    %417 = vector.broadcast %cst_125 : f32 to vector<8x256xf32>
    %418 = arith.addf %417, %416 : vector<8x256xf32>
    %419 = arith.divf %417, %418 : vector<8x256xf32>
    %420 = vector.extract_strided_slice %419 {offsets = [0, 0], sizes = [8, 64], strides = [1, 1]} : vector<8x256xf32> to vector<8x64xf32>
    %421 = vector.extract_strided_slice %419 {offsets = [0, 64], sizes = [8, 64], strides = [1, 1]} : vector<8x256xf32> to vector<8x64xf32>
    %422 = vector.extract_strided_slice %419 {offsets = [0, 128], sizes = [8, 64], strides = [1, 1]} : vector<8x256xf32> to vector<8x64xf32>
    %423 = vector.extract_strided_slice %419 {offsets = [0, 192], sizes = [8, 64], strides = [1, 1]} : vector<8x256xf32> to vector<8x64xf32>
    %cst_126 = arith.constant 2.000000e+00 : f32
    %424 = vector.broadcast %cst_126 : f32 to vector<8x64xf32>
    %425 = arith.mulf %424, %423 : vector<8x64xf32>
    %cst_127 = arith.constant 1.000000e+00 : f32
    %426 = vector.broadcast %cst_127 : f32 to vector<8x64xf32>
    %427 = arith.subf %425, %426 : vector<8x64xf32>
    %428 = arith.mulf %421, %377 : vector<8x64xf32>
    %429 = arith.mulf %420, %427 : vector<8x64xf32>
    %430 = arith.addf %428, %429 : vector<8x64xf32>
    %431 = math.tanh %430 : vector<8x64xf32>
    %432 = arith.mulf %422, %431 : vector<8x64xf32>
    %433 = tpu.concatenate %407, %432 in 1 : vector<8x64xf32>, vector<8x64xf32> -> vector<8x128xf32>
    %c0_128 = arith.constant 0 : index
    %c0_129 = arith.constant 0 : index
    %434 = vector.load %arg10[%c0_128, %c0_129] : memref<8x128xf32, #tpu.memory_space<vmem>>, vector<8x128xf32>
    tpu.vector_store %arg10[%c0_128, %c0_129], %433 {strides = array<i32>} : memref<8x128xf32, #tpu.memory_space<vmem>>, vector<8x128xf32>,
    %435 = tpu.concatenate %405, %430 in 1 : vector<8x64xf32>, vector<8x64xf32> -> vector<8x128xf32>
    %c0_130 = arith.constant 0 : index
    %c0_131 = arith.constant 0 : index
    %436 = vector.load %arg11[%c0_130, %c0_131] : memref<8x128xf32, #tpu.memory_space<vmem>>, vector<8x128xf32>
    tpu.vector_store %arg11[%c0_130, %c0_131], %435 {strides = array<i32>} : memref<8x128xf32, #tpu.memory_space<vmem>>, vector<8x128xf32>,
    %c0_i32_132 = arith.constant 0 : i32
    %437 = arith.cmpi eq, %arg1, %c0_i32_132 : i32
    %438 = arith.extui %437 : i1 to i32
    %c0_i32_133 = arith.constant 0 : i32
    %439 = arith.cmpi ne, %438, %c0_i32_133 : i32
    scf.if %439 {
      %c0_134 = arith.constant 0 : index
      %c0_135 = arith.constant 0 : index
      %440 = vector.load %arg7[%c0_134, %c0_135] : memref<64x1xf32, #tpu.memory_space<vmem>>, vector<64x1xf32>
      %cst_136 = arith.constant dense<0.000000e+00> : vector<8x1xf32>
      %441 = tpu.matmul %432, %440, %cst_136 {dimension_numbers = #tpu.dot_dimension_numbers<[1], [0], [0], [1], [0, 0, 1, 1], [], []>} : vector<8x64xf32>, vector<64x1xf32>, vector<8x1xf32> -> vector<8x1xf32>
      %c0_137 = arith.constant 0 : index
      %c0_138 = arith.constant 0 : index
      %442 = vector.load %arg8[%c0_137, %c0_138] : memref<1x1xf32, #tpu.memory_space<vmem>>, vector<1x1xf32>
      %443 = vector.broadcast %442 : vector<1x1xf32> to vector<8x1xf32>
      %444 = arith.addf %441, %443 : vector<8x1xf32>
      %c0_139 = arith.constant 0 : index
      %c0_140 = arith.constant 0 : index
      %445 = vector.load %arg9[%c0_139, %c0_140] : memref<8x1xf32, #tpu.memory_space<vmem>>, vector<8x1xf32>
      tpu.vector_store %arg9[%c0_139, %c0_140], %444 {strides = array<i32>} : memref<8x1xf32, #tpu.memory_space<vmem>>, vector<8x1xf32>,
    } else {
    }
    return
  }
  func.func @transform_0(%arg0: i32, %arg1: i32) -> (i32, i32, i32) {
    %c0_i32 = arith.constant 0 : i32
    %c0_i32_0 = arith.constant 0 : i32
    return %arg1, %arg0, %c0_i32 : i32, i32, i32
  }
  func.func @transform_1(%arg0: i32, %arg1: i32) -> (i32, i32) {
    %c0_i32 = arith.constant 0 : i32
    %c0_i32_0 = arith.constant 0 : i32
    %c0_i32_1 = arith.constant 0 : i32
    return %c0_i32, %c0_i32_0 : i32, i32
  }
  func.func @transform_2(%arg0: i32, %arg1: i32) -> (i32, i32) {
    %c0_i32 = arith.constant 0 : i32
    %c0_i32_0 = arith.constant 0 : i32
    %c0_i32_1 = arith.constant 0 : i32
    return %c0_i32, %c0_i32_0 : i32, i32
  }
  func.func @transform_3(%arg0: i32, %arg1: i32) -> (i32, i32) {
    %c0_i32 = arith.constant 0 : i32
    %c0_i32_0 = arith.constant 0 : i32
    %c0_i32_1 = arith.constant 0 : i32
    return %c0_i32, %c0_i32_0 : i32, i32
  }
  func.func @transform_4(%arg0: i32, %arg1: i32) -> (i32, i32) {
    %c0_i32 = arith.constant 0 : i32
    %c0_i32_0 = arith.constant 0 : i32
    %c0_i32_1 = arith.constant 0 : i32
    return %c0_i32, %c0_i32_0 : i32, i32
  }
  func.func @transform_5(%arg0: i32, %arg1: i32) -> (i32, i32) {
    %c0_i32 = arith.constant 0 : i32
    %c0_i32_0 = arith.constant 0 : i32
    %c0_i32_1 = arith.constant 0 : i32
    return %c0_i32, %c0_i32_0 : i32, i32
  }
  func.func @transform_6(%arg0: i32, %arg1: i32) -> (i32, i32) {
    %c0_i32 = arith.constant 0 : i32
    %c0_i32_0 = arith.constant 0 : i32
    %c0_i32_1 = arith.constant 0 : i32
    return %c0_i32, %c0_i32_0 : i32, i32
  }
  func.func @transform_7(%arg0: i32, %arg1: i32) -> (i32, i32) {
    %c0_i32 = arith.constant 0 : i32
    %c0_i32_0 = arith.constant 0 : i32
    return %arg0, %c0_i32 : i32, i32
  }
}

</mosaic_0001>

<bundles_post_ra>
// kernel: tpu_custom_call.1
= control target key start
LH: loop header
LB: loop body
LE: loop exit
PB: predicated region body
PF: predicated region fallthrough
CT: control target
= control target key end

     0   :  { %s2840_s0 = inlined_call_operand.vmem [shape: bf16[8,8,64], index: 0, kind: input, shape index: {}]   ;;  %s2841_s1 = inlined_call_operand.hbm [shape: bf16[128,256], index: 1, kind: input, shape index: {}]   ;;  %s2842_s2 = inlined_call_operand.vmem [shape: f32[1,256], index: 2, kind: input, shape index: {}]   ;;  %s2843_s3 = inlined_call_operand.hbm [shape: bf16[128,256], index: 3, kind: input, shape index: {}]   ;;  %s2844_s4 = inlined_call_operand.vmem [shape: f32[1,256], index: 4, kind: input, shape index: {}]   ;;  %s2845_s5 = inlined_call_operand.vmem [shape: f32[64,1], index: 5, kind: input, shape index: {}]   ;;  %s2846_s6 = inlined_call_operand.<no memory space> [shape: f32[1,1], index: 6, kind: input, shape index: {}]   ;;  %s2847_s7 = inlined_call_operand.vmem [shape: f32[8,1], index: 7, kind: output, shape index: {}]  }
   0x1   :  { %v12_v0 = vstv %s2846_s6 }
   0x2   :  { %13 = vst [vmem:[#allocation4] sm:$0x1] %v12_v0 }
   0x3   :  { %14 = vsyncpa [#allocation6], 0 }
   0x4   :  { %15 = vsyncpa [#allocation8], 0  ;;  %s2114_s26 = smov [#allocation5]   ;;  %s2066_s30 = scalar_lea.hbm %s2841_s1, 2048 }
   0x5   :  { %s23_s27 = sshll.u32 %s2114_s26, 4  ;;  %p2067_p0 = scmp.ne.s32.totalorder %s2841_s1, %s2066_s30  ;;  %s24_s27 = int_to_ptr.vmem [resolvable:$true] %s23_s27 }
   0x6   :  { %p2070_p1 = scmp.lt.u32.totalorder %s2066_s30, %s2841_s1 }
   0x8   :  { %p2072_p2 = pnand %p2070_p1, %p2067_p0 }
   0xa   :  { %2075 = shalt.err (!%p2072_p2)
}
   0xb   :  { %s2076_s6 = scalar_lea.vmem %s24_s27, 2048  ;;  %p2081_p4 = scmp.lt.s32.totalorder %s24_s27, %s24_s27 }
   0xc   :  { %p2077_p3 = scmp.ne.s32.totalorder %s24_s27, %s2076_s6  ;;  %p2082_p5 = scmp.lt.s32.totalorder %s2076_s6, %s2076_s6 }
   0xe   :  { %p2083_p6 = por %p2082_p5, %p2081_p4 }
  0x10   :  { %p2084_p7 = pnand %p2083_p6, %p2077_p3 }
  0x12   :  { %2087 = shalt.err (!%p2084_p7)
}
  0x13   :  { %s2115_s12 = smov 128   ;;  %s2116_s13 = smov 8  }
  0x14   :  { %29 = dma.hbm_to_vmem [thread:$0]  %s2841_s1, 2048, %s24_s27, [#allocation6], %s2115_s12, %s2115_s12, %s2116_s13  }
  0x15   :  { %s2117_s16 = smov [#allocation7]   ;;  %s2088_s20 = scalar_lea.hbm %s2843_s3, 2048 }
  0x16   :  { %s37_s17 = sshll.u32 %s2117_s16, 4  ;;  %p2089_p8 = scmp.ne.s32.totalorder %s2843_s3, %s2088_s20  ;;  %s38_s17 = int_to_ptr.vmem [resolvable:$true] %s37_s17 }
  0x17   :  { %p2092_p9 = scmp.lt.u32.totalorder %s2088_s20, %s2843_s3 }
  0x19   :  { %p2094_p10 = pnand %p2092_p9, %p2089_p8 }
  0x1b   :  { %2097 = shalt.err (!%p2094_p10)
}
  0x1c   :  { %s2098_s25 = scalar_lea.vmem %s38_s17, 2048  ;;  %p2103_p12 = scmp.lt.s32.totalorder %s38_s17, %s38_s17 }
  0x1d   :  { %p2099_p11 = scmp.ne.s32.totalorder %s38_s17, %s2098_s25  ;;  %p2104_p13 = scmp.lt.s32.totalorder %s2098_s25, %s2098_s25 }
  0x1f   :  { %p2105_p0 = por %p2104_p13, %p2103_p12 }
  0x21   :  { %p2106_p1 = pnand %p2105_p0, %p2099_p11 }
  0x23   :  { %2109 = shalt.err (!%p2106_p1)
}
  0x24   :  { %43 = dma.hbm_to_vmem [thread:$0]  %s2843_s3, 2048, %s38_s17, [#allocation8], %s2115_s12, %s2115_s12, %s2116_s13  }
  0x25   :  { %2110 = dma.done.wait [#allocation6], 2048  }
  0x26   :  { %2111 = vsyncadd [#allocation6], 4294965248 }
  0x27   :  { %2112 = dma.done.wait [#allocation8], 2048  }
  0x28   :  { %2113 = vsyncadd [#allocation8], 4294965248  ;;  %v2118_v1 = vmov 0.0|0.0   ;;  %s2119_s27 = smov 64   ;;  %v2120_v2 = vmov 0   ;;  %v2121_v3 = vmov 0.0   ;;  %v94_v23 = vlaneseq }
  0x29   :  { %70 = vrot.lane.b32.xlu0 %v2118_v1, %s2119_s27  ;;  %216 = vmatprep.mubr.bf16.mxu0 %v2120_v2  ;;  %v2196_v4 = vld [vmem:[#allocation5 + $0x4] ss:$8 sps:$4 sm:$0xff]   ;;  %v2198_v5 = vld [vmem:[#allocation5] ss:$8 sps:$4 sm:$0xff]   ;;  %v2201_v6 = vld [vmem:[#allocation5 + $0x14] ss:$8 sps:$4 sm:$0xff]  }
  0x2a   :  { %240 = vrot.lane.b32.xlu1 %v2121_v3, %s2119_s27  ;;  %404 = vmatprep.mubr.bf16.mxu1 %v2120_v2  ;;  %v2204_v7 = vld [vmem:[#allocation5 + $0x10] ss:$8 sps:$4 sm:$0xff]   ;;  %v2207_v8 = vld [vmem:[#allocation5 + $0x24] ss:$8 sps:$4 sm:$0xff]   ;;  %v2210_v9 = vld [vmem:[#allocation5 + $0x20] ss:$8 sps:$4 sm:$0xff]  }
  0x2b   :  { %184 = vmatprep.subr.bf16.mxu0 %v2196_v4  ;;  %v2213_v10 = vld [vmem:[#allocation5 + $0x34] ss:$8 sps:$4 sm:$0xff]   ;;  %v2215_v11 = vld [vmem:[#allocation5 + $0x30] ss:$8 sps:$4 sm:$0xff]   ;;  %v2218_v12 = vld [vmem:[#allocation5 + $0x44] ss:$8 sps:$4 sm:$0xff]  }
  0x2c   :  { %185 = vmatpush1.bf16.msra.mxu0 %v2198_v5  ;;  %v2221_v13 = vld [vmem:[#allocation5 + $0x40] ss:$8 sps:$4 sm:$0xff]   ;;  %v2225_v14 = vld [vmem:[#allocation5 + $0x54] ss:$8 sps:$4 sm:$0xff]   ;;  %v2228_v15 = vld [vmem:[#allocation5 + $0x50] ss:$8 sps:$4 sm:$0xff]  }
  0x2d   :  { %186 = vmatprep.subr.bf16.mxu0 %v2201_v6  ;;  %v2231_v16 = vld [vmem:[#allocation5 + $0x64] ss:$8 sps:$4 sm:$0xff]   ;;  %v2234_v17 = vld [vmem:[#allocation5 + $0x60] ss:$8 sps:$4 sm:$0xff]   ;;  %v2237_v18 = vld [vmem:[#allocation5 + $0x74] ss:$8 sps:$4 sm:$0xff]  }
  0x2e   :  { %v2240_v19 = vld [vmem:[#allocation5 + $0x70] ss:$8 sps:$4 sm:$0xff]   ;;  %v67_v20 = vld [vmem:[%s2840_s0] sm:$0xf]  ;;  %vm72_vm0 = vcmask 523264   ;;  %v2266_v24 = vshrl.u32 %v94_v23, 7 }
  0x2f   :  { %v63_v26 = vld [vmem:[%s2842_s2] sm:$0x3]  ;;  %v2285_v48 = vld [vmem:[#allocation7 + $0x4] ss:$8 sps:$4 sm:$0xff]   ;;  %v2293_v51 = vld [vmem:[#allocation7 + $0x10] ss:$8 sps:$4 sm:$0xff]  }
  0x30   :  { %187 = vmatpush1.bf16.msra.mxu0 %v2204_v7  ;;  %v100_v25 = vsub.s32 1, %v2266_v24  ;;  %v96_v39 = vsub.s32 0, %v2266_v24  ;;  %v2287_v49 = vld [vmem:[#allocation7] ss:$8 sps:$4 sm:$0xff]   ;;  %v2289_v50 = vld [vmem:[#allocation7 + $0x14] ss:$8 sps:$4 sm:$0xff]   ;;  %372 = vmatprep.subr.bf16.mxu1 %v2285_v48 }
  0x31   :  { %188 = vmatprep.subr.bf16.mxu0 %v2207_v8  ;;  %373 = vmatpush1.bf16.msra.mxu1 %v2287_v49  ;;  %v2296_v52 = vld [vmem:[#allocation7 + $0x24] ss:$8 sps:$4 sm:$0xff]   ;;  %v2299_v53 = vld [vmem:[#allocation7 + $0x20] ss:$8 sps:$4 sm:$0xff]   ;;  %v2302_v54 = vld [vmem:[#allocation7 + $0x34] ss:$8 sps:$4 sm:$0xff]  }
  0x32   :  { %v2274_v27 = vrot.slane %v63_v26, %v100_v25  ;;  %v2281_v40 = vrot.slane %v63_v26, %v96_v39  ;;  %374 = vmatprep.subr.bf16.mxu1 %v2289_v50  ;;  %v2305_v55 = vld [vmem:[#allocation7 + $0x30] ss:$8 sps:$4 sm:$0xff]   ;;  %v2308_v56 = vld [vmem:[#allocation7 + $0x44] ss:$8 sps:$4 sm:$0xff]   ;;  %v2311_v57 = vld [vmem:[#allocation7 + $0x40] ss:$8 sps:$4 sm:$0xff]  }
  0x33   :  { %v2314_v58 = vld [vmem:[#allocation7 + $0x54] ss:$8 sps:$4 sm:$0xff]   ;;  %v2317_v59 = vld [vmem:[#allocation7 + $0x50] ss:$8 sps:$4 sm:$0xff]   ;;  %v2320_v60 = vld [vmem:[#allocation7 + $0x64] ss:$8 sps:$4 sm:$0xff]  }
  0x34   :  { %189 = vmatpush1.bf16.msra.mxu0 %v2210_v9  ;;  %v2323_v61 = vld [vmem:[#allocation7 + $0x60] ss:$8 sps:$4 sm:$0xff]   ;;  %vm2122_vm1 = vmmov 0   ;;  %vm1680_vm2 = vcmask 7168  }
  0x35   :  { %190 = vmatprep.subr.bf16.mxu0 %v2213_v10  ;;  %375 = vmatpush1.bf16.msra.mxu1 %v2293_v51 }
  0x36   :  { %376 = vmatprep.subr.bf16.mxu1 %v2296_v52 }
  0x38   :  { %191 = vmatpush1.bf16.msra.mxu0 %v2215_v11 }
  0x39   :  { %192 = vmatprep.subr.bf16.mxu0 %v2218_v12  ;;  %377 = vmatpush1.bf16.msra.mxu1 %v2299_v53 }
  0x3a   :  { %378 = vmatprep.subr.bf16.mxu1 %v2302_v54 }
  0x3c   :  { %193 = vmatpush1.bf16.msra.mxu0 %v2221_v13 }
  0x3d   :  { %194 = vmatprep.subr.bf16.mxu0 %v2225_v14  ;;  %379 = vmatpush1.bf16.msra.mxu1 %v2305_v55 }
  0x3e   :  { %380 = vmatprep.subr.bf16.mxu1 %v2308_v56 }
  0x40   :  { %195 = vmatpush1.bf16.msra.mxu0 %v2228_v15 }
  0x41   :  { %196 = vmatprep.subr.bf16.mxu0 %v2231_v16  ;;  %381 = vmatpush1.bf16.msra.mxu1 %v2311_v57 }
  0x42   :  { %382 = vmatprep.subr.bf16.mxu1 %v2314_v58 }
  0x44   :  { %197 = vmatpush1.bf16.msra.mxu0 %v2234_v17 }
  0x45   :  { %198 = vmatprep.subr.bf16.mxu0 %v2237_v18  ;;  %383 = vmatpush1.bf16.msra.mxu1 %v2317_v59 }
  0x46   :  { %384 = vmatprep.subr.bf16.mxu1 %v2320_v60 }
  0x48   :  { %199 = vmatpush1.bf16.msra.mxu0 %v2240_v19 }
  0x49   :  { %453 = vmatprep.subr.bf16.mxu0 %v2196_v4  ;;  %385 = vmatpush1.bf16.msra.mxu1 %v2323_v61 }
  0x9b   :  { %v71_v21 = vpop.permute.xlu0 %70 }
  0x9c   :  { %v75_v22 = vsel %vm72_vm0, %v67_v20, %v71_v21  ;;  %v241_v62 = vpop.permute.xlu1 %240  ;;  %v2327_v20 = vld [vmem:[#allocation7 + $0x74] ss:$8 sps:$4 sm:$0xff]  }
  0x9d   :  { %217 = vmatmul.mubr.bf16.vlgmr.msra.gmra.mrb[0].mxu0 %v75_v22  ;;  %v2331_v22 = vld [vmem:[#allocation7 + $0x70] ss:$8 sps:$4 sm:$0xff]   ;;  %386 = vmatprep.subr.bf16.mxu1 %v2327_v20 }
  0x9e   :  { %454 = vmatpush1.bf16.msra.mxu0 %v2198_v5  ;;  %485 = vmatprep.mubr.bf16.mxu0 %v2120_v2 }
  0x9f   :  { %455 = vmatprep.subr.bf16.mxu0 %v2201_v6  ;;  %387 = vmatpush1.bf16.msra.mxu1 %v2331_v22 }
  0xa0   :  { %534 = vmatprep.subr.bf16.mxu1 %v2285_v48 }
  0xa2   :  { %456 = vmatpush1.bf16.msra.mxu0 %v2204_v7 }
  0xa3   :  { %457 = vmatprep.subr.bf16.mxu0 %v2207_v8 }
  0xa6   :  { %458 = vmatpush1.bf16.msra.mxu0 %v2210_v9 }
  0xa7   :  { %459 = vmatprep.subr.bf16.mxu0 %v2213_v10 }
  0xaa   :  { %460 = vmatpush1.bf16.msra.mxu0 %v2215_v11 }
  0xab   :  { %461 = vmatprep.subr.bf16.mxu0 %v2218_v12 }
  0xae   :  { %462 = vmatpush1.bf16.msra.mxu0 %v2221_v13 }
  0xaf   :  { %463 = vmatprep.subr.bf16.mxu0 %v2225_v14 }
  0xb2   :  { %464 = vmatpush1.bf16.msra.mxu0 %v2228_v15 }
  0xb3   :  { %465 = vmatprep.subr.bf16.mxu0 %v2231_v16 }
  0xb6   :  { %466 = vmatpush1.bf16.msra.mxu0 %v2234_v17 }
  0xb7   :  { %467 = vmatprep.subr.bf16.mxu0 %v2237_v18 }
  0xba   :  { %468 = vmatpush1.bf16.msra.mxu0 %v2240_v19 }
  0xbb   :  { %615 = vmatprep.subr.bf16.mxu0 %v2196_v4 }
 0x170   :  { %v218_v28 = vpop.f32.mrb[0].mxu0 }
 0x171   :  { %v220_v29 = vpop.f32.mrb[1].mxu0  ;;  %v219_v41 = vadd.f32 %v218_v28, %v2281_v40 }
 0x172   :  { %v221_v30 = vadd.f32 %v220_v29, %v2274_v27  ;;  %v222_v31 = vpop.f32.mrb[2].mxu0 }
 0x173   :  { %v223_v32 = vpop.f32.mrb[3].mxu0  ;;  %v1704_v42 = vmul.f32 -1.442695, %v219_v41  ;;  %v1726_v31 = vld [vmem:[%s2840_s0 + $0x4] sm:$0xf] }
 0x174   :  { %v1705_v33 = vmul.f32 -1.442695, %v221_v30 }
 0x176   :  { %1874 = vpow2.f32 %v1705_v33 }
 0x180   :  { %v1875_v34 = vpop.eup %1874 }
 0x181   :  { %v232_v35 = vadd.f32 1.0, %v1875_v34  ;;  %v64_v34 = vld [vmem:[%s2844_s4] sm:$0x3] }
 0x183   :  { %1876 = vrcp.f32 %v232_v35  ;;  %v2383_v35 = vrot.slane %v64_v34, %v100_v25  ;;  %v2389_v25 = vrot.slane %v64_v34, %v96_v39 }
 0x184   :  { %1878 = vpow2.f32 %v1704_v42 }
 0x18d   :  { %v1877_v36 = vpop.eup %1876 }
 0x18e   :  { %v237_v37 = vmul.f32 2.0, %v1877_v36  ;;  %v1879_v43 = vpop.eup %1878 }
 0x18f   :  { %v231_v44 = vadd.f32 1.0, %v1879_v43 }
 0x190   :  { %v1706_v38 = vadd.f32 -1.0, %v237_v37 }
 0x191   :  { %1880 = vrcp.f32 %v231_v44 }
 0x192   :  { %245 = vrot.lane.b32.xlu0 %v1706_v38, %s2119_s27 }
 0x19b   :  { %v1881_v45 = vpop.eup %1880 }
 0x19c   :  { %v243_v63 = vmul.f32 %v1881_v45, %v241_v62 }
 0x204   :  { %v246_v46 = vpop.permute.xlu0 %245 }
 0x205   :  { %v248_v47 = vmul.f32 %v1881_v45, %v246_v46 }
 0x207   :  { %250 = vrot.lane.b32.xlu1 %v248_v47, %s2119_s27 }
 0x279   :  { %v251_v0 = vpop.permute.xlu1 %250 }
 0x27a   :  { %v2329_v21 = vadd.f32 %v251_v0, %v243_v63 }
 0x27c   :  { %1882 = vtanh.f32 %v2329_v21 }
 0x286   :  { %v1883_v23 = vpop.eup %1882 }
 0x287   :  { %256 = vrot.lane.b32.xlu0 %v1883_v23, %s2119_s27 }
 0x2f9   :  { %v257_v26 = vpop.permute.xlu0 %256 }
 0x2fa   :  { %v259_v28 = vmul.f32 %v1877_v36, %v257_v26 }
 0x2fc   :  { %v260_v29 = vpack.c.bf16 %v259_v28, %v259_v28 }
 0x2fe   :  { %447 = vrot.lane.b32.xlu1 %v260_v29, %s2119_s27  ;;  %v263_v30 = vsel %vm72_vm0, %v260_v29, 0.0|0.0 }
 0x2ff   :  { %405 = vmatmul.mubr.bf16.vlgmr.msra.gmra.mrb[0].mxu1 %v263_v30 }
 0x300   :  { %535 = vmatpush1.bf16.msra.mxu1 %v2287_v49  ;;  %566 = vmatprep.mubr.bf16.mxu1 %v2120_v2 }
 0x301   :  { %536 = vmatprep.subr.bf16.mxu1 %v2289_v50 }
 0x304   :  { %537 = vmatpush1.bf16.msra.mxu1 %v2293_v51 }
 0x305   :  { %538 = vmatprep.subr.bf16.mxu1 %v2296_v52 }
 0x308   :  { %539 = vmatpush1.bf16.msra.mxu1 %v2299_v53 }
 0x309   :  { %540 = vmatprep.subr.bf16.mxu1 %v2302_v54 }
 0x30c   :  { %541 = vmatpush1.bf16.msra.mxu1 %v2305_v55 }
 0x30d   :  { %542 = vmatprep.subr.bf16.mxu1 %v2308_v56 }
 0x310   :  { %543 = vmatpush1.bf16.msra.mxu1 %v2311_v57 }
 0x311   :  { %544 = vmatprep.subr.bf16.mxu1 %v2314_v58 }
 0x314   :  { %545 = vmatpush1.bf16.msra.mxu1 %v2317_v59 }
 0x315   :  { %546 = vmatprep.subr.bf16.mxu1 %v2320_v60 }
 0x318   :  { %547 = vmatpush1.bf16.msra.mxu1 %v2323_v61 }
 0x319   :  { %548 = vmatprep.subr.bf16.mxu1 %v2327_v20 }
 0x31c   :  { %549 = vmatpush1.bf16.msra.mxu1 %v2331_v22 }
 0x31d   :  { %696 = vmatprep.subr.bf16.mxu1 %v2285_v48 }
 0x370   :  { %v448_v32 = vpop.permute.xlu1 %447 }
 0x371   :  { %v451_v33 = vsel %vm72_vm0, %v1726_v31, %v448_v32 }
 0x372   :  { %486 = vmatmul.mubr.bf16.vlgmr.msra.gmra.mrb[4].mxu0 %v451_v33 }
 0x373   :  { %616 = vmatpush1.bf16.msra.mxu0 %v2198_v5  ;;  %647 = vmatprep.mubr.bf16.mxu0 %v2120_v2 }
 0x374   :  { %617 = vmatprep.subr.bf16.mxu0 %v2201_v6 }
 0x377   :  { %618 = vmatpush1.bf16.msra.mxu0 %v2204_v7 }
 0x378   :  { %619 = vmatprep.subr.bf16.mxu0 %v2207_v8 }
 0x37b   :  { %620 = vmatpush1.bf16.msra.mxu0 %v2210_v9 }
 0x37c   :  { %621 = vmatprep.subr.bf16.mxu0 %v2213_v10 }
 0x37f   :  { %622 = vmatpush1.bf16.msra.mxu0 %v2215_v11 }
 0x380   :  { %623 = vmatprep.subr.bf16.mxu0 %v2218_v12 }
 0x383   :  { %624 = vmatpush1.bf16.msra.mxu0 %v2221_v13 }
 0x384   :  { %625 = vmatprep.subr.bf16.mxu0 %v2225_v14 }
 0x387   :  { %626 = vmatpush1.bf16.msra.mxu0 %v2228_v15 }
 0x388   :  { %627 = vmatprep.subr.bf16.mxu0 %v2231_v16 }
 0x38b   :  { %628 = vmatpush1.bf16.msra.mxu0 %v2234_v17 }
 0x38c   :  { %629 = vmatprep.subr.bf16.mxu0 %v2237_v18 }
 0x38f   :  { %630 = vmatpush1.bf16.msra.mxu0 %v2240_v19 }
 0x390   :  { %777 = vmatprep.subr.bf16.mxu0 %v2196_v4 }
 0x3d2   :  { %v406_v36 = vpop.f32.mrb[0].mxu1 }
 0x3d3   :  { %v408_v37 = vpop.f32.mrb[1].mxu1  ;;  %v407_v63 = vadd.f32 %v406_v36, %v2389_v25 }
 0x3d4   :  { %v409_v38 = vadd.f32 %v408_v37, %v2383_v35  ;;  %v410_v41 = vpop.f32.mrb[2].mxu1 }
 0x3d5   :  { %v411_v42 = vpop.f32.mrb[3].mxu1  ;;  %v1723_v23 = vmul.f32 -1.442695, %v407_v63 }
 0x3d6   :  { %v1724_v43 = vmul.f32 -1.442695, %v409_v38 }
 0x3d8   :  { %1884 = vpow2.f32 %v1724_v43 }
 0x3e2   :  { %v1885_v44 = vpop.eup %1884 }
 0x3e3   :  { %v420_v45 = vadd.f32 1.0, %v1885_v44 }
 0x3e5   :  { %1886 = vrcp.f32 %v420_v45 }
 0x3e6   :  { %1888 = vpow2.f32 %v1723_v23 }
 0x3ef   :  { %v1887_v46 = vpop.eup %1886 }
 0x3f0   :  { %v425_v47 = vmul.f32 2.0, %v1887_v46  ;;  %v1889_v32 = vpop.eup %1888 }
 0x3f1   :  { %v419_v38 = vadd.f32 1.0, %v1889_v32 }
 0x3f2   :  { %v1725_v62 = vadd.f32 -1.0, %v425_v47 }
 0x3f4   :  { %429 = vrot.lane.b32.xlu0 %v1725_v62, %s2119_s27 }
 0x445   :  { %v487_v0 = vpop.f32.mrb[4].mxu0 }
 0x446   :  { %v489_v26 = vpop.f32.mrb[5].mxu0  ;;  %v488_v43 = vadd.f32 %v487_v0, %v2281_v40 }
 0x447   :  { %v490_v28 = vadd.f32 %v489_v26, %v2274_v27  ;;  %v491_v29 = vpop.f32.mrb[6].mxu0 }
 0x448   :  { %v492_v30 = vpop.f32.mrb[7].mxu0  ;;  %v1727_v44 = vmul.f32 -1.442695, %v488_v43 }
 0x449   :  { %v1728_v31 = vmul.f32 -1.442695, %v490_v28 }
 0x44b   :  { %1890 = vpow2.f32 %v1728_v31 }
 0x455   :  { %v1891_v33 = vpop.eup %1890 }
 0x456   :  { %v501_v37 = vadd.f32 1.0, %v1891_v33 }
 0x458   :  { %1892 = vrcp.f32 %v501_v37 }
 0x459   :  { %1894 = vrcp.f32 %v419_v38 }
 0x45a   :  { %1896 = vpow2.f32 %v1727_v44 }
 0x462   :  { %v1893_v24 = vpop.eup %1892 }
 0x463   :  { %v506_v39 = vmul.f32 2.0, %v1893_v24  ;;  %v1895_v36 = vpop.eup %1894 }
 0x464   :  { %v1897_v45 = vpop.eup %1896  ;;  %v427_v26 = vmul.f32 0.0, %v1895_v36 }
 0x465   :  { %v1729_v34 = vadd.f32 -1.0, %v506_v39  ;;  %v500_v47 = vadd.f32 1.0, %v1897_v45 }
 0x466   :  { %v430_v41 = vpop.permute.xlu0 %429 }
 0x467   :  { %v432_v42 = vmul.f32 %v1895_v36, %v430_v41  ;;  %510 = vrot.lane.b32.xlu1 %v1729_v34, %s2119_s27  ;;  %1898 = vrcp.f32 %v500_v47 }
 0x469   :  { %434 = vrot.lane.b32.xlu0 %v432_v42, %s2119_s27 }
 0x471   :  { %v1899_v62 = vpop.eup %1898 }
 0x472   :  { %v508_v0 = vmul.f32 %v1899_v62, %v2329_v21  ;;  %v1733_v21 = vld [vmem:[%s2840_s0 + $0x8] sm:$0xf] }
 0x4d9   :  { %v511_v63 = vpop.permute.xlu1 %510 }
 0x4da   :  { %v513_v23 = vmul.f32 %v1899_v62, %v511_v63 }
 0x4db   :  { %v435_v28 = vpop.permute.xlu0 %434 }
 0x4dc   :  { %v2396_v29 = vadd.f32 %v435_v28, %v427_v26  ;;  %515 = vrot.lane.b32.xlu1 %v513_v23, %s2119_s27 }
 0x4de   :  { %1900 = vtanh.f32 %v2396_v29 }
 0x4e8   :  { %v1901_v30 = vpop.eup %1900 }
 0x4e9   :  { %440 = vrot.lane.b32.xlu0 %v1901_v30, %s2119_s27 }
 0x54e   :  { %v516_v31 = vpop.permute.xlu1 %515 }
 0x54f   :  { %v2402_v32 = vadd.f32 %v516_v31, %v508_v0 }
 0x551   :  { %1902 = vtanh.f32 %v2402_v32 }
 0x55b   :  { %v1903_v33 = vpop.eup %1902  ;;  %v441_v37 = vpop.permute.xlu0 %440 }
 0x55c   :  { %v443_v38 = vmul.f32 %v1887_v46, %v441_v37  ;;  %521 = vrot.lane.b32.xlu1 %v1903_v33, %s2119_s27 }
 0x55e   :  { %v526_v39 = vpack.c.bf16 %v443_v38, %v443_v38 }
 0x560   :  { %528 = vrot.lane.b32.xlu0 %v526_v39, %s2119_s27 }
 0x5ce   :  { %v522_v34 = vpop.permute.xlu1 %521 }
 0x5cf   :  { %v524_v36 = vmul.f32 %v1893_v24, %v522_v34 }
 0x5d1   :  { %v525_v41 = vpack.c.bf16 %v524_v36, %v524_v36 }
 0x5d2   :  { %v529_v42 = vpop.permute.xlu0 %528 }
 0x5d3   :  { %v532_v43 = vsel %vm72_vm0, %v525_v41, %v529_v42  ;;  %609 = vrot.lane.b32.xlu1 %v525_v41, %s2119_s27 }
 0x5d4   :  { %567 = vmatmul.mubr.bf16.vlgmr.msra.gmra.mrb[4].mxu1 %v532_v43 }
 0x5d5   :  { %697 = vmatpush1.bf16.msra.mxu1 %v2287_v49  ;;  %728 = vmatprep.mubr.bf16.mxu1 %v2120_v2 }
 0x5d6   :  { %698 = vmatprep.subr.bf16.mxu1 %v2289_v50 }
 0x5d9   :  { %699 = vmatpush1.bf16.msra.mxu1 %v2293_v51 }
 0x5da   :  { %700 = vmatprep.subr.bf16.mxu1 %v2296_v52 }
 0x5dd   :  { %701 = vmatpush1.bf16.msra.mxu1 %v2299_v53 }
 0x5de   :  { %702 = vmatprep.subr.bf16.mxu1 %v2302_v54 }
 0x5e1   :  { %703 = vmatpush1.bf16.msra.mxu1 %v2305_v55 }
 0x5e2   :  { %704 = vmatprep.subr.bf16.mxu1 %v2308_v56 }
 0x5e5   :  { %705 = vmatpush1.bf16.msra.mxu1 %v2311_v57 }
 0x5e6   :  { %706 = vmatprep.subr.bf16.mxu1 %v2314_v58 }
 0x5e9   :  { %707 = vmatpush1.bf16.msra.mxu1 %v2317_v59 }
 0x5ea   :  { %708 = vmatprep.subr.bf16.mxu1 %v2320_v60 }
 0x5ed   :  { %709 = vmatpush1.bf16.msra.mxu1 %v2323_v61 }
 0x5ee   :  { %710 = vmatprep.subr.bf16.mxu1 %v2327_v20 }
 0x5f1   :  { %711 = vmatpush1.bf16.msra.mxu1 %v2331_v22 }
 0x5f2   :  { %858 = vmatprep.subr.bf16.mxu1 %v2285_v48 }
 0x645   :  { %v610_v46 = vpop.permute.xlu1 %609 }
 0x646   :  { %v613_v24 = vsel %vm72_vm0, %v1733_v21, %v610_v46 }
 0x647   :  { %648 = vmatmul.mubr.bf16.vlgmr.msra.gmra.mrb[8].mxu0 %v613_v24 }
 0x648   :  { %778 = vmatpush1.bf16.msra.mxu0 %v2198_v5  ;;  %809 = vmatprep.mubr.bf16.mxu0 %v2120_v2 }
 0x649   :  { %779 = vmatprep.subr.bf16.mxu0 %v2201_v6 }
 0x64c   :  { %780 = vmatpush1.bf16.msra.mxu0 %v2204_v7 }
 0x64d   :  { %781 = vmatprep.subr.bf16.mxu0 %v2207_v8 }
 0x650   :  { %782 = vmatpush1.bf16.msra.mxu0 %v2210_v9 }
 0x651   :  { %783 = vmatprep.subr.bf16.mxu0 %v2213_v10 }
 0x654   :  { %784 = vmatpush1.bf16.msra.mxu0 %v2215_v11 }
 0x655   :  { %785 = vmatprep.subr.bf16.mxu0 %v2218_v12 }
 0x658   :  { %786 = vmatpush1.bf16.msra.mxu0 %v2221_v13 }
 0x659   :  { %787 = vmatprep.subr.bf16.mxu0 %v2225_v14 }
 0x65c   :  { %788 = vmatpush1.bf16.msra.mxu0 %v2228_v15 }
 0x65d   :  { %789 = vmatprep.subr.bf16.mxu0 %v2231_v16 }
 0x660   :  { %790 = vmatpush1.bf16.msra.mxu0 %v2234_v17 }
 0x661   :  { %791 = vmatprep.subr.bf16.mxu0 %v2237_v18 }
 0x664   :  { %792 = vmatpush1.bf16.msra.mxu0 %v2240_v19 }
 0x665   :  { %939 = vmatprep.subr.bf16.mxu0 %v2196_v4 }
 0x6a7   :  { %v568_v44 = vpop.f32.mrb[4].mxu1 }
 0x6a8   :  { %v570_v45 = vpop.f32.mrb[5].mxu1  ;;  %v569_v33 = vadd.f32 %v568_v44, %v2389_v25 }
 0x6a9   :  { %v571_v47 = vadd.f32 %v570_v45, %v2383_v35  ;;  %v572_v62 = vpop.f32.mrb[6].mxu1 }
 0x6aa   :  { %v573_v63 = vpop.f32.mrb[7].mxu1  ;;  %v1730_v38 = vmul.f32 -1.442695, %v569_v33 }
 0x6ab   :  { %v1731_v23 = vmul.f32 -1.442695, %v571_v47 }
 0x6ad   :  { %1904 = vpow2.f32 %v1731_v23 }
 0x6b7   :  { %v1905_v26 = vpop.eup %1904 }
 0x6b8   :  { %v582_v28 = vadd.f32 1.0, %v1905_v26 }
 0x6ba   :  { %1906 = vrcp.f32 %v582_v28 }
 0x6bb   :  { %1908 = vpow2.f32 %v1730_v38 }
 0x6c4   :  { %v1907_v30 = vpop.eup %1906 }
 0x6c5   :  { %v587_v0 = vmul.f32 2.0, %v1907_v30  ;;  %v1909_v43 = vpop.eup %1908 }
 0x6c6   :  { %v581_v24 = vadd.f32 1.0, %v1909_v43 }
 0x6c7   :  { %v1732_v31 = vadd.f32 -1.0, %v587_v0 }
 0x6c9   :  { %591 = vrot.lane.b32.xlu0 %v1732_v31, %s2119_s27 }
 0x71a   :  { %v649_v37 = vpop.f32.mrb[8].mxu0 }
 0x71b   :  { %v651_v39 = vpop.f32.mrb[9].mxu0  ;;  %v650_v26 = vadd.f32 %v649_v37, %v2281_v40 }
 0x71c   :  { %v652_v34 = vadd.f32 %v651_v39, %v2274_v27  ;;  %v653_v36 = vpop.f32.mrb[10].mxu0 }
 0x71d   :  { %v654_v41 = vpop.f32.mrb[11].mxu0  ;;  %v1734_v28 = vmul.f32 -1.442695, %v650_v26 }
 0x71e   :  { %v1735_v42 = vmul.f32 -1.442695, %v652_v34 }
 0x720   :  { %1910 = vpow2.f32 %v1735_v42 }
 0x72a   :  { %v1911_v21 = vpop.eup %1910 }
 0x72b   :  { %v663_v46 = vadd.f32 1.0, %v1911_v21 }
 0x72d   :  { %1912 = vrcp.f32 %v663_v46 }
 0x72e   :  { %1914 = vrcp.f32 %v581_v24 }
 0x72f   :  { %1916 = vpow2.f32 %v1734_v28 }
 0x737   :  { %v1913_v45 = vpop.eup %1912 }
 0x738   :  { %v668_v47 = vmul.f32 2.0, %v1913_v45  ;;  %v1915_v44 = vpop.eup %1914 }
 0x739   :  { %v1917_v0 = vpop.eup %1916  ;;  %v589_v34 = vmul.f32 %v1915_v44, %v2396_v29 }
 0x73a   :  { %v1736_v62 = vadd.f32 -1.0, %v668_v47  ;;  %v662_v31 = vadd.f32 1.0, %v1917_v0 }
 0x73b   :  { %v592_v63 = vpop.permute.xlu0 %591 }
 0x73c   :  { %v594_v23 = vmul.f32 %v1915_v44, %v592_v63  ;;  %672 = vrot.lane.b32.xlu1 %v1736_v62, %s2119_s27  ;;  %1918 = vrcp.f32 %v662_v31 }
 0x73e   :  { %596 = vrot.lane.b32.xlu0 %v594_v23, %s2119_s27 }
 0x746   :  { %v1919_v33 = vpop.eup %1918 }
 0x747   :  { %v670_v37 = vmul.f32 %v1919_v33, %v2402_v32  ;;  %v1740_v32 = vld [vmem:[%s2840_s0 + $0xc] sm:$0xf] }
 0x7ae   :  { %v673_v38 = vpop.permute.xlu1 %672 }
 0x7af   :  { %v675_v39 = vmul.f32 %v1919_v33, %v673_v38 }
 0x7b0   :  { %v597_v36 = vpop.permute.xlu0 %596 }
 0x7b1   :  { %v2455_v41 = vadd.f32 %v597_v36, %v589_v34  ;;  %677 = vrot.lane.b32.xlu1 %v675_v39, %s2119_s27 }
 0x7b3   :  { %1920 = vtanh.f32 %v2455_v41 }
 0x7bd   :  { %v1921_v42 = vpop.eup %1920 }
 0x7be   :  { %602 = vrot.lane.b32.xlu0 %v1921_v42, %s2119_s27 }
 0x823   :  { %v678_v43 = vpop.permute.xlu1 %677 }
 0x824   :  { %v2461_v21 = vadd.f32 %v678_v43, %v670_v37 }
 0x826   :  { %1922 = vtanh.f32 %v2461_v21 }
 0x830   :  { %v1923_v46 = vpop.eup %1922  ;;  %v603_v24 = vpop.permute.xlu0 %602 }
 0x831   :  { %v605_v29 = vmul.f32 %v1907_v30, %v603_v24  ;;  %683 = vrot.lane.b32.xlu1 %v1923_v46, %s2119_s27 }
 0x833   :  { %v688_v47 = vpack.c.bf16 %v605_v29, %v605_v29 }
 0x835   :  { %690 = vrot.lane.b32.xlu0 %v688_v47, %s2119_s27 }
 0x8a3   :  { %v684_v62 = vpop.permute.xlu1 %683 }
 0x8a4   :  { %v686_v44 = vmul.f32 %v1913_v45, %v684_v62 }
 0x8a6   :  { %v687_v63 = vpack.c.bf16 %v686_v44, %v686_v44 }
 0x8a7   :  { %v691_v23 = vpop.permute.xlu0 %690 }
 0x8a8   :  { %v694_v26 = vsel %vm72_vm0, %v687_v63, %v691_v23  ;;  %771 = vrot.lane.b32.xlu1 %v687_v63, %s2119_s27 }
 0x8a9   :  { %729 = vmatmul.mubr.bf16.vlgmr.msra.gmra.mrb[8].mxu1 %v694_v26 }
 0x8aa   :  { %859 = vmatpush1.bf16.msra.mxu1 %v2287_v49  ;;  %890 = vmatprep.mubr.bf16.mxu1 %v2120_v2 }
 0x8ab   :  { %860 = vmatprep.subr.bf16.mxu1 %v2289_v50 }
 0x8ae   :  { %861 = vmatpush1.bf16.msra.mxu1 %v2293_v51 }
 0x8af   :  { %862 = vmatprep.subr.bf16.mxu1 %v2296_v52 }
 0x8b2   :  { %863 = vmatpush1.bf16.msra.mxu1 %v2299_v53 }
 0x8b3   :  { %864 = vmatprep.subr.bf16.mxu1 %v2302_v54 }
 0x8b6   :  { %865 = vmatpush1.bf16.msra.mxu1 %v2305_v55 }
 0x8b7   :  { %866 = vmatprep.subr.bf16.mxu1 %v2308_v56 }
 0x8ba   :  { %867 = vmatpush1.bf16.msra.mxu1 %v2311_v57 }
 0x8bb   :  { %868 = vmatprep.subr.bf16.mxu1 %v2314_v58 }
 0x8be   :  { %869 = vmatpush1.bf16.msra.mxu1 %v2317_v59 }
 0x8bf   :  { %870 = vmatprep.subr.bf16.mxu1 %v2320_v60 }
 0x8c2   :  { %871 = vmatpush1.bf16.msra.mxu1 %v2323_v61 }
 0x8c3   :  { %872 = vmatprep.subr.bf16.mxu1 %v2327_v20 }
 0x8c6   :  { %873 = vmatpush1.bf16.msra.mxu1 %v2331_v22 }
 0x8c7   :  { %1020 = vmatprep.subr.bf16.mxu1 %v2285_v48 }
 0x91a   :  { %v772_v30 = vpop.permute.xlu1 %771 }
 0x91b   :  { %v775_v45 = vsel %vm72_vm0, %v1740_v32, %v772_v30 }
 0x91c   :  { %810 = vmatmul.mubr.bf16.vlgmr.msra.gmra.mrb[12].mxu0 %v775_v45 }
 0x91d   :  { %940 = vmatpush1.bf16.msra.mxu0 %v2198_v5  ;;  %971 = vmatprep.mubr.bf16.mxu0 %v2120_v2 }
 0x91e   :  { %941 = vmatprep.subr.bf16.mxu0 %v2201_v6 }
 0x921   :  { %942 = vmatpush1.bf16.msra.mxu0 %v2204_v7 }
 0x922   :  { %943 = vmatprep.subr.bf16.mxu0 %v2207_v8 }
 0x925   :  { %944 = vmatpush1.bf16.msra.mxu0 %v2210_v9 }
 0x926   :  { %945 = vmatprep.subr.bf16.mxu0 %v2213_v10 }
 0x929   :  { %946 = vmatpush1.bf16.msra.mxu0 %v2215_v11 }
 0x92a   :  { %947 = vmatprep.subr.bf16.mxu0 %v2218_v12 }
 0x92d   :  { %948 = vmatpush1.bf16.msra.mxu0 %v2221_v13 }
 0x92e   :  { %949 = vmatprep.subr.bf16.mxu0 %v2225_v14 }
 0x931   :  { %950 = vmatpush1.bf16.msra.mxu0 %v2228_v15 }
 0x932   :  { %951 = vmatprep.subr.bf16.mxu0 %v2231_v16 }
 0x935   :  { %952 = vmatpush1.bf16.msra.mxu0 %v2234_v17 }
 0x936   :  { %953 = vmatprep.subr.bf16.mxu0 %v2237_v18 }
 0x939   :  { %954 = vmatpush1.bf16.msra.mxu0 %v2240_v19 }
 0x93a   :  { %1101 = vmatprep.subr.bf16.mxu0 %v2196_v4 }
 0x97c   :  { %v730_v5 = vpop.f32.mrb[8].mxu1 }
 0x97d   :  { %v732_v28 = vpop.f32.mrb[9].mxu1  ;;  %v731_v43 = vadd.f32 %v730_v5, %v2389_v25 }
 0x97e   :  { %v733_v0 = vadd.f32 %v732_v28, %v2383_v35  ;;  %v734_v31 = vpop.f32.mrb[10].mxu1 }
 0x97f   :  { %v735_v33 = vpop.f32.mrb[11].mxu1  ;;  %v1737_v4 = vmul.f32 -1.442695, %v731_v43 }
 0x980   :  { %v1738_v38 = vmul.f32 -1.442695, %v733_v0 }
 0x982   :  { %1924 = vpow2.f32 %v1738_v38 }
 0x98c   :  { %v1925_v39 = vpop.eup %1924 }
 0x98d   :  { %v744_v34 = vadd.f32 1.0, %v1925_v39 }
 0x98f   :  { %1926 = vrcp.f32 %v744_v34 }
 0x990   :  { %1928 = vpow2.f32 %v1737_v4 }
 0x999   :  { %v1927_v36 = vpop.eup %1926 }
 0x99a   :  { %v749_v42 = vmul.f32 2.0, %v1927_v36  ;;  %v1929_v63 = vpop.eup %1928 }
 0x99b   :  { %v743_v32 = vadd.f32 1.0, %v1929_v63 }
 0x99c   :  { %v1739_v37 = vadd.f32 -1.0, %v749_v42 }
 0x99e   :  { %753 = vrot.lane.b32.xlu0 %v1739_v37, %s2119_s27 }
 0x9ef   :  { %v811_v46 = vpop.f32.mrb[12].mxu0 }
 0x9f0   :  { %v813_v24 = vpop.f32.mrb[13].mxu0  ;;  %v812_v33 = vadd.f32 %v811_v46, %v2281_v40 }
 0x9f1   :  { %v814_v29 = vadd.f32 %v813_v24, %v2274_v27  ;;  %v815_v47 = vpop.f32.mrb[14].mxu0 }
 0x9f2   :  { %v816_v62 = vpop.f32.mrb[15].mxu0  ;;  %v1741_v38 = vmul.f32 -1.442695, %v812_v33 }
 0x9f3   :  { %v1742_v44 = vmul.f32 -1.442695, %v814_v29 }
 0x9f5   :  { %1930 = vpow2.f32 %v1742_v44 }
 0x9ff   :  { %v1931_v23 = vpop.eup %1930 }
 0xa00   :  { %v825_v26 = vadd.f32 1.0, %v1931_v23 }
 0xa02   :  { %1932 = vrcp.f32 %v825_v26 }
 0xa03   :  { %1934 = vrcp.f32 %v743_v32 }
 0xa04   :  { %1936 = vpow2.f32 %v1741_v38 }
 0xa0c   :  { %v1933_v30 = vpop.eup %1932 }
 0xa0d   :  { %v830_v45 = vmul.f32 2.0, %v1933_v30  ;;  %v1935_v5 = vpop.eup %1934 }
 0xa0e   :  { %v1937_v39 = vpop.eup %1936  ;;  %v751_v4 = vmul.f32 %v1935_v5, %v2455_v41 }
 0xa0f   :  { %v1743_v28 = vadd.f32 -1.0, %v830_v45  ;;  %v824_v34 = vadd.f32 1.0, %v1937_v39 }
 0xa10   :  { %v754_v0 = vpop.permute.xlu0 %753 }
 0xa11   :  { %v756_v31 = vmul.f32 %v1935_v5, %v754_v0  ;;  %834 = vrot.lane.b32.xlu1 %v1743_v28, %s2119_s27  ;;  %1938 = vrcp.f32 %v824_v34 }
 0xa13   :  { %758 = vrot.lane.b32.xlu0 %v756_v31, %s2119_s27  ;;  %v2548_v31 = vld [vmem:[#allocation5] ss:$8 sps:$4 sm:$0xff]  }
 0xa1b   :  { %v1939_v42 = vpop.eup %1938 }
 0xa1c   :  { %v832_v46 = vmul.f32 %v1939_v42, %v2461_v21  ;;  %v1747_v21 = vld [vmem:[%s2840_s0 + $0x10] sm:$0xf] }
 0xa83   :  { %v835_v37 = vpop.permute.xlu1 %834 }
 0xa84   :  { %v837_v43 = vmul.f32 %v1939_v42, %v835_v37 }
 0xa85   :  { %v759_v24 = vpop.permute.xlu0 %758 }
 0xa86   :  { %v2514_v29 = vadd.f32 %v759_v24, %v751_v4  ;;  %839 = vrot.lane.b32.xlu1 %v837_v43, %s2119_s27 }
 0xa88   :  { %1940 = vtanh.f32 %v2514_v29 }
 0xa92   :  { %v1941_v47 = vpop.eup %1940 }
 0xa93   :  { %764 = vrot.lane.b32.xlu0 %v1941_v47, %s2119_s27 }
 0xaf8   :  { %v840_v62 = vpop.permute.xlu1 %839 }
 0xaf9   :  { %v2520_v44 = vadd.f32 %v840_v62, %v832_v46 }
 0xafb   :  { %1942 = vtanh.f32 %v2520_v44 }
 0xb05   :  { %v1943_v63 = vpop.eup %1942  ;;  %v765_v23 = vpop.permute.xlu0 %764 }
 0xb06   :  { %v767_v41 = vmul.f32 %v1927_v36, %v765_v23  ;;  %845 = vrot.lane.b32.xlu1 %v1943_v63, %s2119_s27 }
 0xb08   :  { %v850_v26 = vpack.c.bf16 %v767_v41, %v767_v41 }
 0xb0a   :  { %852 = vrot.lane.b32.xlu0 %v850_v26, %s2119_s27 }
 0xb78   :  { %v846_v32 = vpop.permute.xlu1 %845 }
 0xb79   :  { %v848_v45 = vmul.f32 %v1933_v30, %v846_v32 }
 0xb7b   :  { %v849_v28 = vpack.c.bf16 %v848_v45, %v848_v45 }
 0xb7c   :  { %v853_v5 = vpop.permute.xlu0 %852 }
 0xb7d   :  { %v856_v0 = vsel %vm72_vm0, %v849_v28, %v853_v5  ;;  %933 = vrot.lane.b32.xlu1 %v849_v28, %s2119_s27 }
 0xb7e   :  { %891 = vmatmul.mubr.bf16.vlgmr.msra.gmra.mrb[12].mxu1 %v856_v0 }
 0xb7f   :  { %1021 = vmatpush1.bf16.msra.mxu1 %v2287_v49  ;;  %1052 = vmatprep.mubr.bf16.mxu1 %v2120_v2 }
 0xb80   :  { %1022 = vmatprep.subr.bf16.mxu1 %v2289_v50 }
 0xb83   :  { %1023 = vmatpush1.bf16.msra.mxu1 %v2293_v51 }
 0xb84   :  { %1024 = vmatprep.subr.bf16.mxu1 %v2296_v52 }
 0xb87   :  { %1025 = vmatpush1.bf16.msra.mxu1 %v2299_v53 }
 0xb88   :  { %1026 = vmatprep.subr.bf16.mxu1 %v2302_v54 }
 0xb8b   :  { %1027 = vmatpush1.bf16.msra.mxu1 %v2305_v55 }
 0xb8c   :  { %1028 = vmatprep.subr.bf16.mxu1 %v2308_v56 }
 0xb8f   :  { %1029 = vmatpush1.bf16.msra.mxu1 %v2311_v57 }
 0xb90   :  { %1030 = vmatprep.subr.bf16.mxu1 %v2314_v58 }
 0xb93   :  { %1031 = vmatpush1.bf16.msra.mxu1 %v2317_v59 }
 0xb94   :  { %1032 = vmatprep.subr.bf16.mxu1 %v2320_v60 }
 0xb97   :  { %1033 = vmatpush1.bf16.msra.mxu1 %v2323_v61 }
 0xb98   :  { %1034 = vmatprep.subr.bf16.mxu1 %v2327_v20 }
 0xb9b   :  { %1035 = vmatpush1.bf16.msra.mxu1 %v2331_v22 }
 0xb9c   :  { %1182 = vmatprep.subr.bf16.mxu1 %v2285_v48 }
 0xbef   :  { %v934_v36 = vpop.permute.xlu1 %933 }
 0xbf0   :  { %v937_v30 = vsel %vm72_vm0, %v1747_v21, %v934_v36 }
 0xbf1   :  { %972 = vmatmul.mubr.bf16.vlgmr.msra.gmra.mrb[16].mxu0 %v937_v30 }
 0xbf2   :  { %1102 = vmatpush1.bf16.msra.mxu0 %v2548_v31  ;;  %1133 = vmatprep.mubr.bf16.mxu0 %v2120_v2 }
 0xbf3   :  { %1103 = vmatprep.subr.bf16.mxu0 %v2201_v6  ;;  %v2566_v6 = vld [vmem:[#allocation5 + $0x4] ss:$8 sps:$4 sm:$0xff]  }
 0xbf6   :  { %1104 = vmatpush1.bf16.msra.mxu0 %v2204_v7 }
 0xbf7   :  { %1105 = vmatprep.subr.bf16.mxu0 %v2207_v8 }
 0xbfa   :  { %1106 = vmatpush1.bf16.msra.mxu0 %v2210_v9 }
 0xbfb   :  { %1107 = vmatprep.subr.bf16.mxu0 %v2213_v10 }
 0xbfe   :  { %1108 = vmatpush1.bf16.msra.mxu0 %v2215_v11 }
 0xbff   :  { %1109 = vmatprep.subr.bf16.mxu0 %v2218_v12 }
 0xc02   :  { %1110 = vmatpush1.bf16.msra.mxu0 %v2221_v13 }
 0xc03   :  { %1111 = vmatprep.subr.bf16.mxu0 %v2225_v14 }
 0xc06   :  { %1112 = vmatpush1.bf16.msra.mxu0 %v2228_v15 }
 0xc07   :  { %1113 = vmatprep.subr.bf16.mxu0 %v2231_v16 }
 0xc0a   :  { %1114 = vmatpush1.bf16.msra.mxu0 %v2234_v17 }
 0xc0b   :  { %1115 = vmatprep.subr.bf16.mxu0 %v2237_v18 }
 0xc0e   :  { %1116 = vmatpush1.bf16.msra.mxu0 %v2240_v19 }
 0xc0f   :  { %1263 = vmatprep.subr.bf16.mxu0 %v2566_v6 }
 0xc51   :  { %v892_v7 = vpop.f32.mrb[12].mxu1 }
 0xc52   :  { %v894_v8 = vpop.f32.mrb[13].mxu1  ;;  %v893_v18 = vadd.f32 %v892_v7, %v2389_v25 }
 0xc53   :  { %v895_v9 = vadd.f32 %v894_v8, %v2383_v35  ;;  %v896_v10 = vpop.f32.mrb[14].mxu1 }
 0xc54   :  { %v897_v11 = vpop.f32.mrb[15].mxu1  ;;  %v1744_v33 = vmul.f32 -1.442695, %v893_v18 }
 0xc55   :  { %v1745_v12 = vmul.f32 -1.442695, %v895_v9 }
 0xc57   :  { %1944 = vpow2.f32 %v1745_v12 }
 0xc61   :  { %v1945_v13 = vpop.eup %1944 }
 0xc62   :  { %v906_v14 = vadd.f32 1.0, %v1945_v13 }
 0xc64   :  { %1946 = vrcp.f32 %v906_v14 }
 0xc65   :  { %1948 = vpow2.f32 %v1744_v33 }
 0xc6e   :  { %v1947_v15 = vpop.eup %1946 }
 0xc6f   :  { %v911_v16 = vmul.f32 2.0, %v1947_v15  ;;  %v1949_v43 = vpop.eup %1948 }
 0xc70   :  { %v905_v47 = vadd.f32 1.0, %v1949_v43 }
 0xc71   :  { %v1746_v17 = vadd.f32 -1.0, %v911_v16 }
 0xc73   :  { %915 = vrot.lane.b32.xlu0 %v1746_v17, %s2119_s27 }
 0xcc4   :  { %v973_v19 = vpop.f32.mrb[16].mxu0 }
 0xcc5   :  { %v975_v38 = vpop.f32.mrb[17].mxu0  ;;  %v974_v32 = vadd.f32 %v973_v19, %v2281_v40 }
 0xcc6   :  { %v976_v39 = vadd.f32 %v975_v38, %v2274_v27  ;;  %v977_v34 = vpop.f32.mrb[18].mxu0 }
 0xcc7   :  { %v978_v42 = vpop.f32.mrb[19].mxu0  ;;  %v1748_v45 = vmul.f32 -1.442695, %v974_v32 }
 0xcc8   :  { %v1749_v37 = vmul.f32 -1.442695, %v976_v39 }
 0xcca   :  { %1950 = vpow2.f32 %v1749_v37 }
 0xcd4   :  { %v1951_v4 = vpop.eup %1950 }
 0xcd5   :  { %v987_v24 = vadd.f32 1.0, %v1951_v4 }
 0xcd7   :  { %1952 = vrcp.f32 %v987_v24 }
 0xcd8   :  { %1954 = vrcp.f32 %v905_v47 }
 0xcd9   :  { %1956 = vpow2.f32 %v1748_v45 }
 0xce1   :  { %v1953_v46 = vpop.eup %1952 }
 0xce2   :  { %v992_v62 = vmul.f32 2.0, %v1953_v46  ;;  %v1955_v23 = vpop.eup %1954 }
 0xce3   :  { %v1957_v28 = vpop.eup %1956  ;;  %v913_v30 = vmul.f32 %v1955_v23, %v2514_v29 }
 0xce4   :  { %v1750_v63 = vadd.f32 -1.0, %v992_v62  ;;  %v986_v5 = vadd.f32 1.0, %v1957_v28 }
 0xce5   :  { %v916_v41 = vpop.permute.xlu0 %915 }
 0xce6   :  { %v918_v26 = vmul.f32 %v1955_v23, %v916_v41  ;;  %996 = vrot.lane.b32.xlu1 %v1750_v63, %s2119_s27  ;;  %1958 = vrcp.f32 %v986_v5 }
 0xce8   :  { %920 = vrot.lane.b32.xlu0 %v918_v26, %s2119_s27 }
 0xcf0   :  { %v1959_v0 = vpop.eup %1958 }
 0xcf1   :  { %v994_v10 = vmul.f32 %v1959_v0, %v2520_v44  ;;  %v2652_v44 = vld [vmem:[#allocation5 + $0x70] ss:$8 sps:$4 sm:$0xff]  }
 0xd58   :  { %v997_v21 = vpop.permute.xlu1 %996 }
 0xd59   :  { %v999_v36 = vmul.f32 %v1959_v0, %v997_v21 }
 0xd5a   :  { %v921_v7 = vpop.permute.xlu0 %920 }
 0xd5b   :  { %v2577_v8 = vadd.f32 %v921_v7, %v913_v30  ;;  %1001 = vrot.lane.b32.xlu1 %v999_v36, %s2119_s27 }
 0xd5d   :  { %1960 = vtanh.f32 %v2577_v8 }
 0xd67   :  { %v1961_v9 = vpop.eup %1960 }
 0xd68   :  { %926 = vrot.lane.b32.xlu0 %v1961_v9, %s2119_s27 }
 0xdcd   :  { %v1002_v11 = vpop.permute.xlu1 %1001 }
 0xdce   :  { %v2583_v12 = vadd.f32 %v1002_v11, %v994_v10 }
 0xdd0   :  { %1962 = vtanh.f32 %v2583_v12 }
 0xdda   :  { %v1963_v13 = vpop.eup %1962  ;;  %v927_v14 = vpop.permute.xlu0 %926 }
 0xddb   :  { %v929_v29 = vmul.f32 %v1947_v15, %v927_v14  ;;  %1007 = vrot.lane.b32.xlu1 %v1963_v13, %s2119_s27 }
 0xddd   :  { %v1012_v16 = vpack.c.bf16 %v929_v29, %v929_v29 }
 0xddf   :  { %1014 = vrot.lane.b32.xlu0 %v1012_v16, %s2119_s27 }
 0xe4d   :  { %v1008_v17 = vpop.permute.xlu1 %1007 }
 0xe4e   :  { %v1010_v18 = vmul.f32 %v1953_v46, %v1008_v17 }
 0xe50   :  { %v1011_v19 = vpack.c.bf16 %v1010_v18, %v1010_v18 }
 0xe51   :  { %v1015_v33 = vpop.permute.xlu0 %1014 }
 0xe52   :  { %v1018_v38 = vsel %vm72_vm0, %v1011_v19, %v1015_v33  ;;  %1095 = vrot.lane.b32.xlu1 %v1011_v19, %s2119_s27 }
 0xe53   :  { %1053 = vmatmul.mubr.bf16.vlgmr.msra.gmra.mrb[16].mxu1 %v1018_v38 }
 0xe54   :  { %1183 = vmatpush1.bf16.msra.mxu1 %v2287_v49  ;;  %1214 = vmatprep.mubr.bf16.mxu1 %v2120_v2  ;;  %v1754_v49 = vld [vmem:[%s2840_s0 + $0x14] sm:$0xf] }
 0xe55   :  { %1184 = vmatprep.subr.bf16.mxu1 %v2289_v50 }
 0xe58   :  { %1185 = vmatpush1.bf16.msra.mxu1 %v2293_v51 }
 0xe59   :  { %1186 = vmatprep.subr.bf16.mxu1 %v2296_v52  ;;  %v2613_v52 = vld [vmem:[#allocation5 + $0x14] ss:$8 sps:$4 sm:$0xff]  }
 0xe5c   :  { %1187 = vmatpush1.bf16.msra.mxu1 %v2299_v53  ;;  %v2616_v53 = vld [vmem:[#allocation5 + $0x10] ss:$8 sps:$4 sm:$0xff]  }
 0xe5d   :  { %1188 = vmatprep.subr.bf16.mxu1 %v2302_v54  ;;  %v2622_v54 = vld [vmem:[#allocation5 + $0x20] ss:$8 sps:$4 sm:$0xff]  }
 0xe60   :  { %1189 = vmatpush1.bf16.msra.mxu1 %v2305_v55  ;;  %v2625_v55 = vld [vmem:[#allocation5 + $0x34] ss:$8 sps:$4 sm:$0xff]  }
 0xe61   :  { %1190 = vmatprep.subr.bf16.mxu1 %v2308_v56  ;;  %v2628_v56 = vld [vmem:[#allocation5 + $0x30] ss:$8 sps:$4 sm:$0xff]  }
 0xe64   :  { %1191 = vmatpush1.bf16.msra.mxu1 %v2311_v57  ;;  %v2631_v57 = vld [vmem:[#allocation5 + $0x44] ss:$8 sps:$4 sm:$0xff]  }
 0xe65   :  { %1192 = vmatprep.subr.bf16.mxu1 %v2314_v58  ;;  %v2634_v58 = vld [vmem:[#allocation5 + $0x40] ss:$8 sps:$4 sm:$0xff]  }
 0xe68   :  { %1193 = vmatpush1.bf16.msra.mxu1 %v2317_v59  ;;  %v2637_v59 = vld [vmem:[#allocation5 + $0x54] ss:$8 sps:$4 sm:$0xff]  }
 0xe69   :  { %1194 = vmatprep.subr.bf16.mxu1 %v2320_v60  ;;  %v2640_v60 = vld [vmem:[#allocation5 + $0x50] ss:$8 sps:$4 sm:$0xff]  }
 0xe6c   :  { %1195 = vmatpush1.bf16.msra.mxu1 %v2323_v61  ;;  %v2643_v61 = vld [vmem:[#allocation5 + $0x64] ss:$8 sps:$4 sm:$0xff]  }
 0xe6d   :  { %1196 = vmatprep.subr.bf16.mxu1 %v2327_v20  ;;  %v2646_v20 = vld [vmem:[#allocation5 + $0x60] ss:$8 sps:$4 sm:$0xff]  }
 0xe70   :  { %1197 = vmatpush1.bf16.msra.mxu1 %v2331_v22  ;;  %v2649_v22 = vld [vmem:[#allocation5 + $0x74] ss:$8 sps:$4 sm:$0xff]  }
 0xe71   :  { %1344 = vmatprep.subr.bf16.mxu1 %v2285_v48  ;;  %v2619_v48 = vld [vmem:[#allocation5 + $0x24] ss:$8 sps:$4 sm:$0xff]  }
 0xec4   :  { %v1096_v50 = vpop.permute.xlu1 %1095 }
 0xec5   :  { %v1099_v51 = vsel %vm72_vm0, %v1754_v49, %v1096_v50 }
 0xec6   :  { %1134 = vmatmul.mubr.bf16.vlgmr.msra.gmra.mrb[20].mxu0 %v1099_v51 }
 0xec7   :  { %1264 = vmatpush1.bf16.msra.mxu0 %v2548_v31  ;;  %1295 = vmatprep.mubr.bf16.mxu0 %v2120_v2 }
 0xec8   :  { %1265 = vmatprep.subr.bf16.mxu0 %v2613_v52 }
 0xecb   :  { %1266 = vmatpush1.bf16.msra.mxu0 %v2616_v53 }
 0xecc   :  { %1267 = vmatprep.subr.bf16.mxu0 %v2619_v48 }
 0xecf   :  { %1268 = vmatpush1.bf16.msra.mxu0 %v2622_v54 }
 0xed0   :  { %1269 = vmatprep.subr.bf16.mxu0 %v2625_v55 }
 0xed3   :  { %1270 = vmatpush1.bf16.msra.mxu0 %v2628_v56 }
 0xed4   :  { %1271 = vmatprep.subr.bf16.mxu0 %v2631_v57 }
 0xed7   :  { %1272 = vmatpush1.bf16.msra.mxu0 %v2634_v58 }
 0xed8   :  { %1273 = vmatprep.subr.bf16.mxu0 %v2637_v59 }
 0xedb   :  { %1274 = vmatpush1.bf16.msra.mxu0 %v2640_v60 }
 0xedc   :  { %1275 = vmatprep.subr.bf16.mxu0 %v2643_v61 }
 0xedf   :  { %1276 = vmatpush1.bf16.msra.mxu0 %v2646_v20 }
 0xee0   :  { %1277 = vmatprep.subr.bf16.mxu0 %v2649_v22 }
 0xee3   :  { %1278 = vmatpush1.bf16.msra.mxu0 %v2652_v44 }
 0xee4   :  { %1425 = vmatprep.subr.bf16.mxu0 %v2566_v6 }
 0xf26   :  { %v1054_v15 = vpop.f32.mrb[16].mxu1 }
 0xf27   :  { %v1056_v39 = vpop.f32.mrb[17].mxu1  ;;  %v1055_v63 = vadd.f32 %v1054_v15, %v2389_v25 }
 0xf28   :  { %v1057_v34 = vadd.f32 %v1056_v39, %v2383_v35  ;;  %v1058_v42 = vpop.f32.mrb[18].mxu1 }
 0xf29   :  { %v1059_v37 = vpop.f32.mrb[19].mxu1  ;;  %v1751_v6 = vmul.f32 -1.442695, %v1055_v63 }
 0xf2a   :  { %v1752_v43 = vmul.f32 -1.442695, %v1057_v34 }
 0xf2c   :  { %1964 = vpow2.f32 %v1752_v43 }
 0xf36   :  { %v1965_v4 = vpop.eup %1964 }
 0xf37   :  { %v1068_v24 = vadd.f32 1.0, %v1965_v4 }
 0xf39   :  { %1966 = vrcp.f32 %v1068_v24 }
 0xf3a   :  { %1968 = vpow2.f32 %v1751_v6  ;;  %v2687_v6 = vld [vmem:[#allocation7 + $0x24] ss:$8 sps:$4 sm:$0xff]  }
 0xf43   :  { %v1967_v47 = vpop.eup %1966 }
 0xf44   :  { %v1073_v46 = vmul.f32 2.0, %v1967_v47  ;;  %v1969_v5 = vpop.eup %1968 }
 0xf45   :  { %v1067_v36 = vadd.f32 1.0, %v1969_v5  ;;  %v2705_v5 = vld [vmem:[#allocation7 + $0x54] ss:$8 sps:$4 sm:$0xff]  }
 0xf46   :  { %v1753_v62 = vadd.f32 -1.0, %v1073_v46 }
 0xf48   :  { %1077 = vrot.lane.b32.xlu0 %v1753_v62, %s2119_s27 }
 0xf99   :  { %v1135_v23 = vpop.f32.mrb[20].mxu0 }
 0xf9a   :  { %v1137_v41 = vpop.f32.mrb[21].mxu0  ;;  %v1136_v14 = vadd.f32 %v1135_v23, %v2281_v40  ;;  %v2684_v23 = vld [vmem:[#allocation7 + $0x10] ss:$8 sps:$4 sm:$0xff]  }
 0xf9b   :  { %v1138_v26 = vadd.f32 %v1137_v41, %v2274_v27  ;;  %v1139_v32 = vpop.f32.mrb[22].mxu0  ;;  %v2690_v41 = vld [vmem:[#allocation7 + $0x20] ss:$8 sps:$4 sm:$0xff]  }
 0xf9c   :  { %v1140_v45 = vpop.f32.mrb[23].mxu0  ;;  %v1755_v29 = vmul.f32 -1.442695, %v1136_v14  ;;  %v2696_v32 = vld [vmem:[#allocation7 + $0x30] ss:$8 sps:$4 sm:$0xff]  }
 0xf9d   :  { %v1756_v28 = vmul.f32 -1.442695, %v1138_v26  ;;  %v2693_v26 = vld [vmem:[#allocation7 + $0x34] ss:$8 sps:$4 sm:$0xff]   ;;  %v2699_v45 = vld [vmem:[#allocation7 + $0x44] ss:$8 sps:$4 sm:$0xff]  }
 0xf9f   :  { %1970 = vpow2.f32 %v1756_v28  ;;  %v2702_v28 = vld [vmem:[#allocation7 + $0x40] ss:$8 sps:$4 sm:$0xff]  }
 0xfa9   :  { %v1971_v0 = vpop.eup %1970 }
 0xfaa   :  { %v1149_v21 = vadd.f32 1.0, %v1971_v0  ;;  %v2708_v0 = vld [vmem:[#allocation7 + $0x50] ss:$8 sps:$4 sm:$0xff]  }
 0xfac   :  { %1972 = vrcp.f32 %v1149_v21  ;;  %v2711_v21 = vld [vmem:[#allocation7 + $0x64] ss:$8 sps:$4 sm:$0xff]  }
 0xfad   :  { %1974 = vrcp.f32 %v1067_v36  ;;  %v2714_v36 = vld [vmem:[#allocation7 + $0x60] ss:$8 sps:$4 sm:$0xff]  }
 0xfae   :  { %1976 = vpow2.f32 %v1755_v29 }
 0xfb6   :  { %v1973_v30 = vpop.eup %1972 }
 0xfb7   :  { %v1154_v7 = vmul.f32 2.0, %v1973_v30  ;;  %v1975_v10 = vpop.eup %1974 }
 0xfb8   :  { %v1977_v16 = vpop.eup %1976  ;;  %v1075_v38 = vmul.f32 %v1975_v10, %v2577_v8 }
 0xfb9   :  { %v1757_v9 = vadd.f32 -1.0, %v1154_v7  ;;  %v1148_v17 = vadd.f32 1.0, %v1977_v16  ;;  %v2720_v7 = vld [vmem:[#allocation7 + $0x70] ss:$8 sps:$4 sm:$0xff]  }
 0xfba   :  { %v1078_v11 = vpop.permute.xlu0 %1077 }
 0xfbb   :  { %v1080_v13 = vmul.f32 %v1975_v10, %v1078_v11  ;;  %1158 = vrot.lane.b32.xlu1 %v1757_v9, %s2119_s27  ;;  %1978 = vrcp.f32 %v1148_v17  ;;  %v2065_v9 = vld [vmem:[#allocation7 + $0x4] ss:$8 sps:$4 sm:$0xff]   ;;  %v1761_v10 = vld [vmem:[%s2840_s0 + $0x18] sm:$0xf] }
 0xfbd   :  { %1082 = vrot.lane.b32.xlu0 %v1080_v13, %s2119_s27 }
 0xfc5   :  { %v1979_v18 = vpop.eup %1978 }
 0xfc6   :  { %v1156_v15 = vmul.f32 %v1979_v18, %v2583_v12  ;;  %v2677_v12 = vld [vmem:[#allocation7] ss:$8 sps:$4 sm:$0xff]  }
0x102d   :  { %v1159_v19 = vpop.permute.xlu1 %1158 }
0x102e   :  { %v1161_v33 = vmul.f32 %v1979_v18, %v1159_v19 }
0x102f   :  { %v1083_v49 = vpop.permute.xlu0 %1082 }
0x1030   :  { %v2664_v50 = vadd.f32 %v1083_v49, %v1075_v38  ;;  %1163 = vrot.lane.b32.xlu1 %v1161_v33, %s2119_s27 }
0x1032   :  { %1980 = vtanh.f32 %v2664_v50 }
0x103c   :  { %v1981_v51 = vpop.eup %1980 }
0x103d   :  { %1088 = vrot.lane.b32.xlu0 %v1981_v51, %s2119_s27 }
0x10a2   :  { %v1164_v39 = vpop.permute.xlu1 %1163 }
0x10a3   :  { %v2670_v34 = vadd.f32 %v1164_v39, %v1156_v15 }
0x10a5   :  { %1982 = vtanh.f32 %v2670_v34 }
0x10af   :  { %v1983_v42 = vpop.eup %1982  ;;  %v1089_v37 = vpop.permute.xlu0 %1088 }
0x10b0   :  { %v1091_v8 = vmul.f32 %v1967_v47, %v1089_v37  ;;  %1169 = vrot.lane.b32.xlu1 %v1983_v42, %s2119_s27  ;;  %v2681_v47 = vld [vmem:[#allocation7 + $0x14] ss:$8 sps:$4 sm:$0xff]  }
0x10b2   :  { %v1174_v43 = vpack.c.bf16 %v1091_v8, %v1091_v8 }
0x10b4   :  { %1176 = vrot.lane.b32.xlu0 %v1174_v43, %s2119_s27 }
0x1122   :  { %v1170_v4 = vpop.permute.xlu1 %1169 }
0x1123   :  { %v1172_v24 = vmul.f32 %v1973_v30, %v1170_v4  ;;  %v2717_v30 = vld [vmem:[#allocation7 + $0x74] ss:$8 sps:$4 sm:$0xff]  }
0x1125   :  { %v1173_v46 = vpack.c.bf16 %v1172_v24, %v1172_v24 }
0x1126   :  { %v1177_v62 = vpop.permute.xlu0 %1176 }
0x1127   :  { %v1180_v63 = vsel %vm72_vm0, %v1173_v46, %v1177_v62  ;;  %1257 = vrot.lane.b32.xlu1 %v1173_v46, %s2119_s27 }
0x1128   :  { %1215 = vmatmul.mubr.bf16.vlgmr.msra.gmra.mrb[20].mxu1 %v1180_v63 }
0x1129   :  { %1345 = vmatpush1.bf16.msra.mxu1 %v2677_v12  ;;  %1376 = vmatprep.mubr.bf16.mxu1 %v2120_v2 }
0x112a   :  { %1346 = vmatprep.subr.bf16.mxu1 %v2681_v47 }
0x112d   :  { %1347 = vmatpush1.bf16.msra.mxu1 %v2684_v23 }
0x112e   :  { %1348 = vmatprep.subr.bf16.mxu1 %v2687_v6 }
0x1131   :  { %1349 = vmatpush1.bf16.msra.mxu1 %v2690_v41 }
0x1132   :  { %1350 = vmatprep.subr.bf16.mxu1 %v2693_v26 }
0x1135   :  { %1351 = vmatpush1.bf16.msra.mxu1 %v2696_v32 }
0x1136   :  { %1352 = vmatprep.subr.bf16.mxu1 %v2699_v45 }
0x1139   :  { %1353 = vmatpush1.bf16.msra.mxu1 %v2702_v28 }
0x113a   :  { %1354 = vmatprep.subr.bf16.mxu1 %v2705_v5 }
0x113d   :  { %1355 = vmatpush1.bf16.msra.mxu1 %v2708_v0 }
0x113e   :  { %1356 = vmatprep.subr.bf16.mxu1 %v2711_v21 }
0x1141   :  { %1357 = vmatpush1.bf16.msra.mxu1 %v2714_v36 }
0x1142   :  { %1358 = vmatprep.subr.bf16.mxu1 %v2717_v30 }
0x1145   :  { %1359 = vmatpush1.bf16.msra.mxu1 %v2720_v7 }
0x1146   :  { %1506 = vmatprep.subr.bf16.mxu1 %v2065_v9 }
0x1199   :  { %v1258_v11 = vpop.permute.xlu1 %1257 }
0x119a   :  { %v1261_v13 = vsel %vm72_vm0, %v1761_v10, %v1258_v11 }
0x119b   :  { %1296 = vmatmul.mubr.bf16.vlgmr.msra.gmra.mrb[24].mxu0 %v1261_v13 }
0x119c   :  { %1426 = vmatpush1.bf16.msra.mxu0 %v2548_v31  ;;  %1457 = vmatprep.mubr.bf16.mxu0 %v2120_v2 }
0x119d   :  { %1427 = vmatprep.subr.bf16.mxu0 %v2613_v52 }
0x11a0   :  { %1428 = vmatpush1.bf16.msra.mxu0 %v2616_v53 }
0x11a1   :  { %1429 = vmatprep.subr.bf16.mxu0 %v2619_v48 }
0x11a4   :  { %1430 = vmatpush1.bf16.msra.mxu0 %v2622_v54 }
0x11a5   :  { %1431 = vmatprep.subr.bf16.mxu0 %v2625_v55 }
0x11a8   :  { %1432 = vmatpush1.bf16.msra.mxu0 %v2628_v56 }
0x11a9   :  { %1433 = vmatprep.subr.bf16.mxu0 %v2631_v57 }
0x11ac   :  { %1434 = vmatpush1.bf16.msra.mxu0 %v2634_v58 }
0x11ad   :  { %1435 = vmatprep.subr.bf16.mxu0 %v2637_v59 }
0x11b0   :  { %1436 = vmatpush1.bf16.msra.mxu0 %v2640_v60 }
0x11b1   :  { %1437 = vmatprep.subr.bf16.mxu0 %v2643_v61 }
0x11b4   :  { %1438 = vmatpush1.bf16.msra.mxu0 %v2646_v20 }
0x11b5   :  { %1439 = vmatprep.subr.bf16.mxu0 %v2649_v22 }
0x11b8   :  { %1440 = vmatpush1.bf16.msra.mxu0 %v2652_v44 }
0x11b9   :  { %1805 = vmatprep.subr.bf16.mxu0 %v2118_v1 }
0x11fb   :  { %v1216_v31 = vpop.f32.mrb[20].mxu1 }
0x11fc   :  { %v1218_v52 = vpop.f32.mrb[21].mxu1  ;;  %v1217_v61 = vadd.f32 %v1216_v31, %v2389_v25 }
0x11fd   :  { %v1219_v53 = vadd.f32 %v1218_v52, %v2383_v35  ;;  %v1220_v48 = vpop.f32.mrb[22].mxu1 }
0x11fe   :  { %v1221_v54 = vpop.f32.mrb[23].mxu1  ;;  %v1758_v22 = vmul.f32 -1.442695, %v1217_v61 }
0x11ff   :  { %v1759_v55 = vmul.f32 -1.442695, %v1219_v53 }
0x1201   :  { %1984 = vpow2.f32 %v1759_v55 }
0x120b   :  { %v1985_v56 = vpop.eup %1984 }
0x120c   :  { %v1230_v57 = vadd.f32 1.0, %v1985_v56 }
0x120e   :  { %1986 = vrcp.f32 %v1230_v57 }
0x120f   :  { %1988 = vpow2.f32 %v1758_v22 }
0x1218   :  { %v1987_v58 = vpop.eup %1986 }
0x1219   :  { %v1235_v59 = vmul.f32 2.0, %v1987_v58  ;;  %v1989_v18 = vpop.eup %1988 }
0x121a   :  { %v1229_v38 = vadd.f32 1.0, %v1989_v18 }
0x121b   :  { %v1760_v60 = vadd.f32 -1.0, %v1235_v59 }
0x121d   :  { %1239 = vrot.lane.b32.xlu0 %v1760_v60, %s2119_s27 }
0x126e   :  { %v1297_v20 = vpop.f32.mrb[24].mxu0 }
0x126f   :  { %v1299_v44 = vpop.f32.mrb[25].mxu0  ;;  %v1298_v8 = vadd.f32 %v1297_v20, %v2281_v40 }
0x1270   :  { %v1300_v14 = vadd.f32 %v1299_v44, %v2274_v27  ;;  %v1301_v29 = vpop.f32.mrb[26].mxu0 }
0x1271   :  { %v1302_v16 = vpop.f32.mrb[27].mxu0  ;;  %v1762_v43 = vmul.f32 -1.442695, %v1298_v8 }
0x1272   :  { %v1763_v17 = vmul.f32 -1.442695, %v1300_v14 }
0x1274   :  { %1990 = vpow2.f32 %v1763_v17 }
0x127e   :  { %v1991_v19 = vpop.eup %1990 }
0x127f   :  { %v1311_v33 = vadd.f32 1.0, %v1991_v19 }
0x1281   :  { %1992 = vrcp.f32 %v1311_v33 }
0x1282   :  { %1994 = vrcp.f32 %v1229_v38 }
0x1283   :  { %1996 = vpow2.f32 %v1762_v43 }
0x128b   :  { %v1993_v49 = vpop.eup %1992 }
0x128c   :  { %v1316_v51 = vmul.f32 2.0, %v1993_v49  ;;  %v1995_v39 = vpop.eup %1994 }
0x128d   :  { %v1997_v4 = vpop.eup %1996  ;;  %v1237_v9 = vmul.f32 %v1995_v39, %v2664_v50 }
0x128e   :  { %v1764_v15 = vadd.f32 -1.0, %v1316_v51  ;;  %v1310_v24 = vadd.f32 1.0, %v1997_v4 }
0x128f   :  { %v1240_v42 = vpop.permute.xlu0 %1239 }
0x1290   :  { %v1242_v37 = vmul.f32 %v1995_v39, %v1240_v42  ;;  %1320 = vrot.lane.b32.xlu1 %v1764_v15, %s2119_s27  ;;  %1998 = vrcp.f32 %v1310_v24 }
0x1292   :  { %1244 = vrot.lane.b32.xlu0 %v1242_v37, %s2119_s27 }
0x129a   :  { %v1999_v46 = vpop.eup %1998 }
0x129b   :  { %v1318_v31 = vmul.f32 %v1999_v46, %v2670_v34 }
0x1302   :  { %v1321_v62 = vpop.permute.xlu1 %1320 }
0x1303   :  { %v1323_v63 = vmul.f32 %v1999_v46, %v1321_v62 }
0x1304   :  { %v1245_v10 = vpop.permute.xlu0 %1244 }
0x1305   :  { %v2752_v11 = vadd.f32 %v1245_v10, %v1237_v9  ;;  %1325 = vrot.lane.b32.xlu1 %v1323_v63, %s2119_s27 }
0x1307   :  { %2000 = vtanh.f32 %v2752_v11 }
0x1311   :  { %v2001_v13 = vpop.eup %2000 }
0x1312   :  { %1250 = vrot.lane.b32.xlu0 %v2001_v13, %s2119_s27 }
0x1377   :  { %v1326_v52 = vpop.permute.xlu1 %1325 }
0x1378   :  { %v2758_v53 = vadd.f32 %v1326_v52, %v1318_v31 }
0x137a   :  { %2002 = vtanh.f32 %v2758_v53 }
0x1384   :  { %v2003_v48 = vpop.eup %2002  ;;  %v1251_v54 = vpop.permute.xlu0 %1250 }
0x1385   :  { %v1253_v50 = vmul.f32 %v1987_v58, %v1251_v54  ;;  %1331 = vrot.lane.b32.xlu1 %v2003_v48, %s2119_s27 }
0x1387   :  { %v1336_v55 = vpack.c.bf16 %v1253_v50, %v1253_v50 }
0x1389   :  { %1338 = vrot.lane.b32.xlu0 %v1336_v55, %s2119_s27 }
0x13f7   :  { %v1332_v56 = vpop.permute.xlu1 %1331 }
0x13f8   :  { %v1334_v57 = vmul.f32 %v1993_v49, %v1332_v56 }
0x13fa   :  { %v1335_v59 = vpack.c.bf16 %v1334_v57, %v1334_v57 }
0x13fb   :  { %v1339_v60 = vpop.permute.xlu0 %1338 }
0x13fc   :  { %v1342_v61 = vsel %vm72_vm0, %v1335_v59, %v1339_v60  ;;  %1419 = vrot.lane.b32.xlu1 %v1335_v59, %s2119_s27 }
0x13fd   :  { %1377 = vmatmul.mubr.bf16.vlgmr.msra.gmra.mrb[24].mxu1 %v1342_v61 }
0x13fe   :  { %1507 = vmatpush1.bf16.msra.mxu1 %v2677_v12  ;;  %1538 = vmatprep.mubr.bf16.mxu1 %v2120_v2  ;;  %v1768_v2 = vld [vmem:[%s2840_s0 + $0x1c] sm:$0xf] }
0x13ff   :  { %1508 = vmatprep.subr.bf16.mxu1 %v2681_v47 }
0x1402   :  { %1509 = vmatpush1.bf16.msra.mxu1 %v2684_v23 }
0x1403   :  { %1510 = vmatprep.subr.bf16.mxu1 %v2687_v6 }
0x1406   :  { %1511 = vmatpush1.bf16.msra.mxu1 %v2690_v41 }
0x1407   :  { %1512 = vmatprep.subr.bf16.mxu1 %v2693_v26 }
0x140a   :  { %1513 = vmatpush1.bf16.msra.mxu1 %v2696_v32 }
0x140b   :  { %1514 = vmatprep.subr.bf16.mxu1 %v2699_v45 }
0x140e   :  { %1515 = vmatpush1.bf16.msra.mxu1 %v2702_v28 }
0x140f   :  { %1516 = vmatprep.subr.bf16.mxu1 %v2705_v5 }
0x1412   :  { %1517 = vmatpush1.bf16.msra.mxu1 %v2708_v0 }
0x1413   :  { %1518 = vmatprep.subr.bf16.mxu1 %v2711_v21 }
0x1416   :  { %1519 = vmatpush1.bf16.msra.mxu1 %v2714_v36 }
0x1417   :  { %1520 = vmatprep.subr.bf16.mxu1 %v2717_v30 }
0x141a   :  { %1521 = vmatpush1.bf16.msra.mxu1 %v2720_v7 }
0x146e   :  { %v1420_v34 = vpop.permute.xlu1 %1419 }
0x146f   :  { %v1423_v12 = vsel %vm72_vm0, %v1768_v2, %v1420_v34 }
0x1470   :  { %1458 = vmatmul.mubr.bf16.vlgmr.msra.gmra.mrb[28].mxu0 %v1423_v12 }
0x1471   :  { %1802 = vmatprep.mubr.msk.f32.mxu0 %vm2122_vm1, %v2121_v3 }
0x14d0   :  { %v1378_v47 = vpop.f32.mrb[24].mxu1 }
0x14d1   :  { %v1380_v23 = vpop.f32.mrb[25].mxu1  ;;  %v1379_v36 = vadd.f32 %v1378_v47, %v2389_v25 }
0x14d2   :  { %v1381_v6 = vadd.f32 %v1380_v23, %v2383_v35  ;;  %v1382_v41 = vpop.f32.mrb[26].mxu1 }
0x14d3   :  { %v1383_v26 = vpop.f32.mrb[27].mxu1  ;;  %v1765_v7 = vmul.f32 -1.442695, %v1379_v36 }
0x14d4   :  { %v1766_v32 = vmul.f32 -1.442695, %v1381_v6 }
0x14d6   :  { %2004 = vpow2.f32 %v1766_v32 }
0x14e0   :  { %v2005_v45 = vpop.eup %2004 }
0x14e1   :  { %v1392_v28 = vadd.f32 1.0, %v2005_v45 }
0x14e3   :  { %2006 = vrcp.f32 %v1392_v28 }
0x14e4   :  { %2008 = vpow2.f32 %v1765_v7 }
0x14ed   :  { %v2007_v5 = vpop.eup %2006 }
0x14ee   :  { %v1397_v0 = vmul.f32 2.0, %v2007_v5  ;;  %v2009_v29 = vpop.eup %2008 }
0x14ef   :  { %v1391_v18 = vadd.f32 1.0, %v2009_v29 }
0x14f0   :  { %v1767_v21 = vadd.f32 -1.0, %v1397_v0  ;;  %v1593_v0 = vld [vmem:[%s2845_s5] sm:$0xff] }
0x14f2   :  { %1401 = vrot.lane.b32.xlu0 %v1767_v21, %s2119_s27  ;;  %v1594_v21 = vld [vmem:[%s2845_s5 + $0x8] sm:$0xff] }
0x14f3   :  { %v1806_v36 = vpack.c.bf16 %v1594_v21, %v1593_v0 }
0x14f5   :  { %1807 = vmatpush3.bf16.msra.mxu0 %v1806_v36 }
0x14f6   :  { %1808 = vmatprep.subr.bf16.mxu0 %v2118_v1 }
0x1543   :  { %v1459_v30 = vpop.f32.mrb[28].mxu0 }
0x1544   :  { %v1461_v58 = vpop.f32.mrb[29].mxu0 }
0x1545   :  { %v1462_v20 = vadd.f32 %v1461_v58, %v2274_v27  ;;  %v1463_v22 = vpop.f32.mrb[30].mxu0  ;;  %v1460_v27 = vadd.f32 %v1459_v30, %v2281_v40  ;;  %v1596_v30 = vld [vmem:[%s2845_s5 + $0x18] sm:$0xff]  ;;  %v1597_v58 = vld [vmem:[%s2845_s5 + $0x20] sm:$0xff] }
0x1546   :  { %v1464_v44 = vpop.f32.mrb[31].mxu0 }
0x1547   :  { %v1770_v14 = vmul.f32 -1.442695, %v1462_v20  ;;  %v1769_v39 = vmul.f32 -1.442695, %v1460_v27  ;;  %v1598_v20 = vld [vmem:[%s2845_s5 + $0x28] sm:$0xff]  ;;  %v1599_v44 = vld [vmem:[%s2845_s5 + $0x30] sm:$0xff] }
0x1548   :  { %v1812_v22 = vpack.c.bf16 %v1598_v20, %v1597_v58 }
0x1549   :  { %2010 = vpow2.f32 %v1770_v14  ;;  %v1600_v14 = vld [vmem:[%s2845_s5 + $0x38] sm:$0xff] }
0x154a   :  { %v1815_v29 = vpack.c.bf16 %v1600_v14, %v1599_v44 }
0x1553   :  { %v2011_v16 = vpop.eup %2010 }
0x1554   :  { %v1473_v17 = vadd.f32 1.0, %v2011_v16 }
0x1556   :  { %2012 = vrcp.f32 %v1473_v17 }
0x1557   :  { %2014 = vrcp.f32 %v1391_v18 }
0x1558   :  { %2016 = vpow2.f32 %v1769_v39 }
0x1560   :  { %v2013_v19 = vpop.eup %2012 }
0x1561   :  { %v1478_v33 = vmul.f32 2.0, %v2013_v19  ;;  %v2015_v49 = vpop.eup %2014 }
0x1562   :  { %v2017_v42 = vpop.eup %2016  ;;  %v1399_v24 = vmul.f32 %v2015_v49, %v2752_v11 }
0x1563   :  { %v1771_v38 = vadd.f32 -1.0, %v1478_v33  ;;  %v1472_v37 = vadd.f32 1.0, %v2017_v42 }
0x1564   :  { %v1402_v51 = vpop.permute.xlu0 %1401 }
0x1565   :  { %v1404_v15 = vmul.f32 %v2015_v49, %v1402_v51  ;;  %1482 = vrot.lane.b32.xlu1 %v1771_v38, %s2119_s27  ;;  %2018 = vrcp.f32 %v1472_v37  ;;  %v1775_v49 = vld [vmem:[#allocation4] ss:$0 sm:$0xff] }
0x1567   :  { %1406 = vrot.lane.b32.xlu0 %v1404_v15, %s2119_s27 }
0x156f   :  { %v2019_v8 = vpop.eup %2018 }
0x1570   :  { %v1480_v40 = vmul.f32 %v2019_v8, %v2758_v53 }
0x15d7   :  { %v1483_v43 = vpop.permute.xlu1 %1482 }
0x15d8   :  { %v1485_v4 = vmul.f32 %v2019_v8, %v1483_v43 }
0x15d9   :  { %v1407_v46 = vpop.permute.xlu0 %1406 }
0x15da   :  { %v2793_v62 = vadd.f32 %v1407_v46, %v1399_v24  ;;  %1487 = vrot.lane.b32.xlu1 %v1485_v4, %s2119_s27 }
0x15dc   :  { %2020 = vtanh.f32 %v2793_v62 }
0x15e6   :  { %v2021_v63 = vpop.eup %2020 }
0x15e7   :  { %1412 = vrot.lane.b32.xlu0 %v2021_v63, %s2119_s27 }
0x164c   :  { %v1488_v9 = vpop.permute.xlu1 %1487 }
0x164d   :  { %v1490_v10 = vadd.f32 %v1488_v9, %v1480_v40 }
0x164f   :  { %2022 = vtanh.f32 %v1490_v10 }
0x1659   :  { %v2023_v13 = vpop.eup %2022  ;;  %v1413_v31 = vpop.permute.xlu0 %1412 }
0x165a   :  { %v1415_v52 = vmul.f32 %v2007_v5, %v1413_v31  ;;  %1493 = vrot.lane.b32.xlu1 %v2023_v13, %s2119_s27 }
0x165c   :  { %v1498_v11 = vpack.c.bf16 %v1415_v52, %v1415_v52 }
0x165e   :  { %1500 = vrot.lane.b32.xlu0 %v1498_v11, %s2119_s27 }
0x16cc   :  { %v1494_v48 = vpop.permute.xlu1 %1493 }
0x16cd   :  { %v1496_v54 = vmul.f32 %v2013_v19, %v1494_v48 }
0x16cf   :  { %v1497_v50 = vpack.c.bf16 %v1496_v54, %v1496_v54 }
0x16d0   :  { %v1501_v55 = vpop.permute.xlu0 %1500 }
0x16d1   :  { %v1504_v56 = vsel %vm72_vm0, %v1497_v50, %v1501_v55 }
0x16d2   :  { %1539 = vmatmul.mubr.bf16.vlgmr.msra.gmra.mrb[28].mxu1 %v1504_v56 }
0x17a5   :  { %v1540_v57 = vpop.f32.mrb[28].mxu1 }
0x17a6   :  { %v1542_v53 = vpop.f32.mrb[29].mxu1  ;;  %v1541_v41 = vadd.f32 %v1540_v57, %v2389_v25  ;;  %v1595_v25 = vld [vmem:[%s2845_s5 + $0x10] sm:$0xff] }
0x17a7   :  { %v1543_v59 = vadd.f32 %v1542_v53, %v2383_v35  ;;  %v1544_v60 = vpop.f32.mrb[30].mxu1  ;;  %v1809_v7 = vpack.c.bf16 %v1596_v30, %v1595_v25 }
0x17a8   :  { %v1545_v61 = vpop.f32.mrb[31].mxu1  ;;  %v1772_v26 = vmul.f32 -1.442695, %v1541_v41 }
0x17a9   :  { %v1773_v2 = vmul.f32 -1.442695, %v1543_v59  ;;  %1810 = vmatpush3.bf16.msra.mxu0 %v1809_v7 }
0x17aa   :  { %1811 = vmatprep.subr.bf16.mxu0 %v2118_v1 }
0x17ab   :  { %2024 = vpow2.f32 %v1773_v2 }
0x17ad   :  { %1813 = vmatpush3.bf16.msra.mxu0 %v1812_v22 }
0x17ae   :  { %1814 = vmatprep.subr.bf16.mxu0 %v2118_v1 }
0x17b1   :  { %1816 = vmatpush3.bf16.msra.mxu0 %v1815_v29 }
0x17b5   :  { %v2025_v34 = vpop.eup %2024 }
0x17b6   :  { %v1554_v12 = vadd.f32 1.0, %v2025_v34 }
0x17b8   :  { %2026 = vrcp.f32 %v1554_v12 }
0x17b9   :  { %2028 = vpow2.f32 %v1772_v26 }
0x17c2   :  { %v2027_v47 = vpop.eup %2026 }
0x17c3   :  { %v1559_v23 = vmul.f32 2.0, %v2027_v47  ;;  %v2029_v32 = vpop.eup %2028 }
0x17c4   :  { %v1553_v45 = vadd.f32 1.0, %v2029_v32 }
0x17c5   :  { %v1774_v6 = vadd.f32 -1.0, %v1559_v23 }
0x17c6   :  { %2030 = vrcp.f32 %v1553_v45 }
0x17c7   :  { %1563 = vrot.lane.b32.xlu1 %v1774_v6, %s2119_s27 }
0x17d0   :  { %v2031_v35 = vpop.eup %2030 }
0x17d1   :  { %v1561_v16 = vmul.f32 %v2031_v35, %v2793_v62 }
0x1839   :  { %v1564_v28 = vpop.permute.xlu1 %1563 }
0x183a   :  { %v1566_v5 = vmul.f32 %v2031_v35, %v1564_v28 }
0x183c   :  { %1568 = vrot.lane.b32.xlu0 %v1566_v5, %s2119_s27 }
0x18ae   :  { %v1569_v17 = vpop.permute.xlu0 %1568 }
0x18af   :  { %v1571_v18 = vadd.f32 %v1569_v17, %v1561_v16 }
0x18b1   :  { %2032 = vtanh.f32 %v1571_v18 }
0x18bb   :  { %v2033_v19 = vpop.eup %2032 }
0x18bc   :  { %1574 = vrot.lane.b32.xlu1 %v2033_v19, %s2119_s27 }
0x192e   :  { %v1575_v33 = vpop.permute.xlu1 %1574 }
0x192f   :  { %v1577_v38 = vmul.f32 %v2027_v47, %v1575_v33 }
0x1931   :  { %1803 = vmatmul.mubr.msk.f32.vlgmr.msra.gmra.mrb[32].mxu0 %vm72_vm0, %v1577_v38 }
0x1a04   :  { %v1676_v51 = vpop.f32.mrb[32].mxu0 }
0x1a05   :  { %v1677_v1 = vadd.f32 %v1775_v49, %v1676_v51  ;;  %v1804_v15 = vpop.f32.mrb[33].mxu0 }
0x1a07   :  { %1681 = vst.msk [vmem:[%s2847_s7] sm:$0xff] %vm1680_vm2, %v1677_v1 }
0x1a08   :  { %1686 = vsyncpa [#allocation6], 1 }
0x1a09   :  { %1687 = vsyncpa [#allocation8], 1 }

</bundles_post_ra>
